<compile_context>
chip_gen: v6e
topology: v6e:2x2x1
jax: 0.10.0
libtpu: 0.0.40
codegen_flags: <defaults>
</compile_context>

<pallas_src>
import functools

import jax
import jax.numpy as jnp
from jax.experimental import pallas as pl
from jax.experimental.pallas import tpu as pltpu


# ----------------------------- configuration ------------------------------ #
class Args:
    city_num = 8             # N  -> LSTM encoder input size = N*N = 64
    lstm_hidden_size = 32    # H
    lstm_layers = 1          # single-layer LSTMs
    pred_len = 4
    dropout = 0.0            # inference: dropout is identity
    seq_len = 8              # T
    batch = 2                # B

BP = 8  # padded per-timestep batch rows (one full f32 sublane group)


def _rup(v, m):
    return (v + m - 1) // m * m


# ------------------------------ Pallas kernel ------------------------------ #
def _mgatt_lstm_kernel(
    x_ref,      # (T*BP, F)   f32   time-major, batch padded to BP rows/step
    w_ref,      # (rows, WC)  f32   packed weights (gate order i,f,o,g; i/f/o *0.5)
    b_ref,      # (8, WC)     f32   packed biases  (same gate order/scaling)
    out_ref,    # (BP, OUT)   f32
    gx_ref,     # (T*BP, 4H)  f32   VMEM scratch: hoisted encoder input projection
    *,
    T, F, H, H2, OUT, offs,
):
    o_ih_e, o_hh_e, o_dih, o_dhh, o_fc = offs
    GH, GD = 4 * H, 4 * H2
    f32 = jnp.float32

    b_e = b_ref[0:1, 0:GH]                           # (1, 4H)
    b_d = b_ref[1:2, 0:GD]                           # (1, 8H)

    # Hoisted encoder input projection: one (T*BP, F) x (F, 4H) MXU call.
    # wih_e loaded right here (single use), result staged in VMEM scratch.
    wih_e = w_ref[o_ih_e:o_ih_e + F, 0:GH]           # (F, 4H)
    gx_ref[...] = jnp.dot(x_ref[...], wih_e, preferred_element_type=f32) + b_e

    def gate_act(gates, c, hid):
        # Packed gate columns are [0.5*z_i, 0.5*z_f, 0.5*z_o, z_g] (scaling
        # folded into weights/biases at pack time), so a single full-width
        # tanh gives both the sigmoid gates and the g gate:
        #   sigmoid(z) = 0.5 * tanh(0.5*z) + 0.5
        th = jnp.tanh(gates)                          # 1 EUP pass, full width
        sig = 0.5 * th[:, 0:3 * hid] + 0.5            # contiguous, offset 0
        i = sig[:, 0 * hid:1 * hid]
        f = sig[:, 1 * hid:2 * hid]
        o = sig[:, 2 * hid:3 * hid]
        g = th[:, 3 * hid:4 * hid]
        c_new = f * c + i * g
        h_new = o * jnp.tanh(c_new)                   # 1 EUP pass, H wide
        return h_new, c_new

    h_e = jnp.zeros((BP, H), f32)
    c_e = jnp.zeros((BP, H), f32)
    h_d = jnp.zeros((BP, H2), f32)
    c_d = jnp.zeros((BP, H2), f32)

    # Fully unrolled time loop (T small & static). decoder(t) depends only on
    # h_e(t), h_d(t-1); encoder(t+1) depends only on h_e(t), c_e(t) -> the
    # scheduler can overlap them inside this single basic block.
    for t in range(T):
        # Recurrent weights re-loaded from VMEM each step (free vld slots,
        # bounds live ranges across the unrolled loop).
        whh_e = w_ref[o_hh_e:o_hh_e + H, 0:GH]        # (H, 4H)
        g_e = gx_ref[t * BP:(t + 1) * BP, :] + jnp.dot(
            h_e, whh_e, preferred_element_type=f32)
        h_e, c_e = gate_act(g_e, c_e, H)

        # Decoder: two independent MXU products summed in f32 (no lane concat).
        wih_d = w_ref[o_dih:o_dih + H, 0:GD]          # (H, 8H)
        whh_d = w_ref[o_dhh:o_dhh + H2, 0:GD]         # (2H, 8H)
        g_d = (jnp.dot(h_e, wih_d, preferred_element_type=f32)
               + jnp.dot(h_d, whh_d, preferred_element_type=f32) + b_d)
        h_d, c_d = gate_act(g_d, c_d, H2)

    # Fully-connect on decoder_seq[:, -1, :] (= last decoder hidden state).
    wfc = w_ref[o_fc:o_fc + H2, 0:OUT]                # (2H, P*N)
    bfc = b_ref[2:3, 0:OUT]                           # (1, P*N)
    out_ref[...] = jnp.dot(h_d, wfc, preferred_element_type=f32) + bfc


# ------------------------------ host wrapper ------------------------------- #
def pack_params(params, args):
    """Pack the 8 weight/bias arrays into one f32 weight buffer + one f32 bias
    buffer (3 input DMAs total). Gate columns are reordered from PyTorch's
    (i, f, g, o) to (i, f, o, g), and the i/f/o columns (and biases) are
    pre-scaled by 0.5 so the kernel can use sigmoid(z)=0.5*tanh(0.5*z)+0.5
    with a single full-width tanh per cell."""
    N = args.city_num
    F = N * N
    H = args.lstm_hidden_size
    H2 = 2 * H
    OUT = args.pred_len * N
    GH, GD = 4 * H, 4 * H2

    def reorder_scale(w, hid):
        # w: (in, 4*hid) in PyTorch gate order (i, f, g, o)
        i = w[..., 0 * hid:1 * hid]
        f = w[..., 1 * hid:2 * hid]
        g = w[..., 2 * hid:3 * hid]
        o = w[..., 3 * hid:4 * hid]
        return jnp.concatenate([0.5 * i, 0.5 * f, 0.5 * o, g], axis=-1)

    wih_e = reorder_scale(params["wih_e"], H)
    whh_e = reorder_scale(params["whh_e"], H)
    b_e = reorder_scale(params["b_e"], H)
    wih_d = reorder_scale(params["wih_d"], H2)
    whh_d = reorder_scale(params["whh_d"], H2)
    b_d = reorder_scale(params["b_d"], H2)

    w_cols = _rup(max(GH, GD, OUT), 128)
    # Row offsets aligned to 8 (f32 sublane tile).
    o_ih_e = 0
    o_hh_e = _rup(o_ih_e + F, 8)
    o_dih = _rup(o_hh_e + H, 8)
    o_dhh = _rup(o_dih + H, 8)
    o_fc = _rup(o_dhh + H2, 8)
    n_rows = _rup(o_fc + H2, 8)

    w = jnp.zeros((n_rows, w_cols), jnp.float32)
    w = w.at[o_ih_e:o_ih_e + F, :GH].set(wih_e)
    w = w.at[o_hh_e:o_hh_e + H, :GH].set(whh_e)
    w = w.at[o_dih:o_dih + H, :GD].set(wih_d)
    w = w.at[o_dhh:o_dhh + H2, :GD].set(whh_d)
    w = w.at[o_fc:o_fc + H2, :OUT].set(params["wfc"])

    b = jnp.zeros((8, w_cols), jnp.float32)
    b = b.at[0:1, :GH].set(b_e)
    b = b.at[1:2, :GD].set(b_d)
    b = b.at[2, :OUT].set(params["bfc"][0])

    return w, b, (o_ih_e, o_hh_e, o_dih, o_dhh, o_fc)


def mgatt_lstm_forward(input_x, params, args):
    """input_x: (B, T, N, N) float32 -> (B, pred_len, city_num)."""
    B, T, N, _ = input_x.shape
    assert N == args.city_num
    assert B <= BP
    F = N * N
    H = args.lstm_hidden_size
    H2 = 2 * H
    OUT = args.pred_len * N

    # MGAtt (TODO(synk): undefined in source -> identity) + dropout (eval: id)
    x_flat = input_x.reshape(B, T, F).astype(jnp.float32)
    # Time-major, batch padded to BP rows per step: row t*BP + b = x[b, t].
    x_tm = jnp.transpose(x_flat, (1, 0, 2))                  # (T, B, F)
    x_pad = jnp.zeros((T, BP, F), jnp.float32).at[:, :B, :].set(x_tm)
    x_pad = x_pad.reshape(T * BP, F)

    w_packed, b_packed, offs = pack_params(params, args)

    kernel = functools.partial(
        _mgatt_lstm_kernel, T=T, F=F, H=H, H2=H2, OUT=OUT, offs=offs)

    vmem = functools.partial(pl.BlockSpec, memory_space=pltpu.MemorySpace.VMEM)
    out = pl.pallas_call(
        kernel,
        out_shape=jax.ShapeDtypeStruct((BP, OUT), jnp.float32),
        in_specs=[vmem(), vmem(), vmem()],
        out_specs=vmem(),
        scratch_shapes=[pltpu.VMEM((T * BP, 4 * H), jnp.float32)],
    )(x_pad, w_packed, b_packed)
    # Drop padded rows, reshape to (B, pred_len, city_num).
    return out[:B].reshape(B, args.pred_len, args.city_num)


# --------------------------- pure-JAX reference ----------------------------- #
def reference_forward(input_x, params, args):
    B, T, N, _ = input_x.shape
    F = N * N
    H = args.lstm_hidden_size
    H2 = 2 * H
    x = input_x.reshape(B, T, F)

    def lstm(x_seq, wih, whh, b, hid):
        def step(carry, xt):
            h, c = carry
            z = xt @ wih + h @ whh + b[0]
            i = jax.nn.sigmoid(z[:, 0 * hid:1 * hid])
            f = jax.nn.sigmoid(z[:, 1 * hid:2 * hid])
            g = jnp.tanh(z[:, 2 * hid:3 * hid])
            o = jax.nn.sigmoid(z[:, 3 * hid:4 * hid])
            c = f * c + i * g
            h = o * jnp.tanh(c)
            return (h, c), h
        h0 = jnp.zeros((B, hid), jnp.float32)
        c0 = jnp.zeros((B, hid), jnp.float32)
        (_, _), hs = jax.lax.scan(step, (h0, c0), jnp.transpose(x_seq, (1, 0, 2)))
        return jnp.transpose(hs, (1, 0, 2))

    enc = lstm(x, params["wih_e"], params["whh_e"], params["b_e"], H)
    dec = lstm(enc, params["wih_d"], params["whh_d"], params["b_d"], H2)
    out = dec[:, -1, :] @ params["wfc"] + params["bfc"][0]
    return out.reshape(B, args.pred_len, args.city_num)


def init_params(key, args):
    """Deterministic init matching PyTorch LSTM/Linear parameter shapes.

    Weights are stored transposed (in_features, out_features) for x @ W.
    LSTM biases b_ih and b_hh are pre-summed into a single bias row.
    Gate ordering here is PyTorch's (i, f, g, o); pack_params reorders/scales.
    """
    N = args.city_num
    F = N * N
    H = args.lstm_hidden_size
    H2 = 2 * H
    P = args.pred_len

    ks = jax.random.split(key, 8)
    u = lambda k, shape, bound: jax.random.uniform(
        k, shape, jnp.float32, minval=-bound, maxval=bound)

    b_enc = 1.0 / jnp.sqrt(H)
    b_dec = 1.0 / jnp.sqrt(H2)
    params = {
        # encoder LSTM: input F -> hidden H
        "wih_e": u(ks[0], (F, 4 * H), b_enc),
        "whh_e": u(ks[1], (H, 4 * H), b_enc),
        "b_e":   u(ks[2], (1, 4 * H), b_enc),
        # decoder LSTM: input H -> hidden 2H
        "wih_d": u(ks[3], (H, 4 * H2), b_dec),
        "whh_d": u(ks[4], (H2, 4 * H2), b_dec),
        "b_d":   u(ks[5], (1, 4 * H2), b_dec),
        # fully connect: 2H -> pred_len * city_num
        "wfc":   u(ks[6], (H2, P * N), 1.0 / jnp.sqrt(H2)),
        "bfc":   u(ks[7], (1, P * N), 1.0 / jnp.sqrt(H2)),
    }
    return params


if __name__ == "__main__":
    args = Args()
    key = jax.random.PRNGKey(0)
    k_x, k_p = jax.random.split(key)

    # input_x: (B, T, N, N) — MGAtt-fused spatio-temporal tensor
    input_x = jax.random.normal(
        k_x, (args.batch, args.seq_len, args.city_num, args.city_num),
        dtype=jnp.float32)
    params = init_params(k_p, args)

    fc_out = mgatt_lstm_forward(input_x, params, args)
    fc_out = jax.block_until_ready(fc_out)

    assert fc_out.shape == (args.batch, args.pred_len, args.city_num)
    assert jnp.all(jnp.isfinite(fc_out))

    ref_out = jax.block_until_ready(reference_forward(input_x, params, args))
    max_err = float(jnp.max(jnp.abs(fc_out - ref_out)))
    assert max_err < 2e-3, f"mismatch vs reference: max_err={max_err}"

    print("KERNEL_OK")
</pallas_src>

<mosaic_0001>
module attributes {stable_mosaic.version = 11 : i64} {
  func.func @_mgatt_lstm_kernel(%arg0: memref<64x64xf32, #tpu.memory_space<vmem>>, %arg1: memref<256x256xf32, #tpu.memory_space<vmem>>, %arg2: memref<8x256xf32, #tpu.memory_space<vmem>>, %arg3: memref<8x32xf32, #tpu.memory_space<vmem>>, %arg4: memref<64x128xf32, #tpu.memory_space<vmem>>) attributes {dimension_semantics = [], scalar_prefetch = 0 : i64, scratch_operands = 1 : i64, tpu.core_type = #tpu.core_type<tc>} {
    %c0 = arith.constant 0 : index
    %c0_0 = arith.constant 0 : index
    %0 = vector.load %arg2[%c0, %c0_0] : memref<8x256xf32, #tpu.memory_space<vmem>>, vector<1x128xf32>
    %c1 = arith.constant 1 : index
    %c0_1 = arith.constant 0 : index
    %1 = vector.load %arg2[%c1, %c0_1] : memref<8x256xf32, #tpu.memory_space<vmem>>, vector<1x256xf32>
    %c0_2 = arith.constant 0 : index
    %c0_3 = arith.constant 0 : index
    %2 = vector.load %arg1[%c0_2, %c0_3] : memref<256x256xf32, #tpu.memory_space<vmem>>, vector<64x128xf32>
    %c0_4 = arith.constant 0 : index
    %c0_5 = arith.constant 0 : index
    %3 = vector.load %arg0[%c0_4, %c0_5] : memref<64x64xf32, #tpu.memory_space<vmem>>, vector<64x64xf32>
    %cst = arith.constant dense<0.000000e+00> : vector<64x128xf32>
    %4 = tpu.matmul %3, %2, %cst {dimension_numbers = #tpu.dot_dimension_numbers<[1], [0], [0], [1], [0, 0, 1, 1], [], []>} : vector<64x64xf32>, vector<64x128xf32>, vector<64x128xf32> -> vector<64x128xf32>
    %5 = vector.broadcast %0 : vector<1x128xf32> to vector<64x128xf32>
    %6 = arith.addf %4, %5 : vector<64x128xf32>
    %c0_6 = arith.constant 0 : index
    %c0_7 = arith.constant 0 : index
    %7 = vector.load %arg4[%c0_6, %c0_7] : memref<64x128xf32, #tpu.memory_space<vmem>>, vector<64x128xf32>
    tpu.vector_store %arg4[%c0_6, %c0_7], %6 {strides = array<i32>} : memref<64x128xf32, #tpu.memory_space<vmem>>, vector<64x128xf32>,
    %cst_8 = arith.constant 0.000000e+00 : f32
    %8 = vector.broadcast %cst_8 : f32 to vector<8x32xf32>
    %cst_9 = arith.constant 0.000000e+00 : f32
    %9 = vector.broadcast %cst_9 : f32 to vector<8x32xf32>
    %cst_10 = arith.constant 0.000000e+00 : f32
    %10 = vector.broadcast %cst_10 : f32 to vector<8x64xf32>
    %cst_11 = arith.constant 0.000000e+00 : f32
    %11 = vector.broadcast %cst_11 : f32 to vector<8x64xf32>
    %c64 = arith.constant 64 : index
    %c0_12 = arith.constant 0 : index
    %12 = vector.load %arg1[%c64, %c0_12] : memref<256x256xf32, #tpu.memory_space<vmem>>, vector<32x128xf32>
    %c0_13 = arith.constant 0 : index
    %c0_14 = arith.constant 0 : index
    %13 = vector.load %arg4[%c0_13, %c0_14] : memref<64x128xf32, #tpu.memory_space<vmem>>, vector<8x128xf32>
    %cst_15 = arith.constant dense<0.000000e+00> : vector<8x128xf32>
    %14 = tpu.matmul %8, %12, %cst_15 {dimension_numbers = #tpu.dot_dimension_numbers<[1], [0], [0], [1], [0, 0, 1, 1], [], []>} : vector<8x32xf32>, vector<32x128xf32>, vector<8x128xf32> -> vector<8x128xf32>
    %15 = arith.addf %13, %14 : vector<8x128xf32>
    %16 = math.tanh %15 : vector<8x128xf32>
    %17 = vector.extract_strided_slice %16 {offsets = [0, 0], sizes = [8, 96], strides = [1, 1]} : vector<8x128xf32> to vector<8x96xf32>
    %cst_16 = arith.constant 5.000000e-01 : f32
    %18 = vector.broadcast %cst_16 : f32 to vector<8x96xf32>
    %19 = arith.mulf %18, %17 : vector<8x96xf32>
    %cst_17 = arith.constant 5.000000e-01 : f32
    %20 = vector.broadcast %cst_17 : f32 to vector<8x96xf32>
    %21 = arith.addf %19, %20 : vector<8x96xf32>
    %22 = vector.extract_strided_slice %21 {offsets = [0, 0], sizes = [8, 32], strides = [1, 1]} : vector<8x96xf32> to vector<8x32xf32>
    %23 = vector.extract_strided_slice %21 {offsets = [0, 32], sizes = [8, 32], strides = [1, 1]} : vector<8x96xf32> to vector<8x32xf32>
    %24 = vector.extract_strided_slice %21 {offsets = [0, 64], sizes = [8, 32], strides = [1, 1]} : vector<8x96xf32> to vector<8x32xf32>
    %25 = vector.extract_strided_slice %16 {offsets = [0, 96], sizes = [8, 32], strides = [1, 1]} : vector<8x128xf32> to vector<8x32xf32>
    %26 = arith.mulf %23, %9 : vector<8x32xf32>
    %27 = arith.mulf %22, %25 : vector<8x32xf32>
    %28 = arith.addf %26, %27 : vector<8x32xf32>
    %29 = math.tanh %28 : vector<8x32xf32>
    %30 = arith.mulf %24, %29 : vector<8x32xf32>
    %c96 = arith.constant 96 : index
    %c0_18 = arith.constant 0 : index
    %31 = vector.load %arg1[%c96, %c0_18] : memref<256x256xf32, #tpu.memory_space<vmem>>, vector<32x256xf32>
    %c128 = arith.constant 128 : index
    %c0_19 = arith.constant 0 : index
    %32 = vector.load %arg1[%c128, %c0_19] : memref<256x256xf32, #tpu.memory_space<vmem>>, vector<64x256xf32>
    %cst_20 = arith.constant dense<0.000000e+00> : vector<8x256xf32>
    %33 = tpu.matmul %30, %31, %cst_20 {dimension_numbers = #tpu.dot_dimension_numbers<[1], [0], [0], [1], [0, 0, 1, 1], [], []>} : vector<8x32xf32>, vector<32x256xf32>, vector<8x256xf32> -> vector<8x256xf32>
    %cst_21 = arith.constant dense<0.000000e+00> : vector<8x256xf32>
    %34 = tpu.matmul %10, %32, %cst_21 {dimension_numbers = #tpu.dot_dimension_numbers<[1], [0], [0], [1], [0, 0, 1, 1], [], []>} : vector<8x64xf32>, vector<64x256xf32>, vector<8x256xf32> -> vector<8x256xf32>
    %35 = arith.addf %33, %34 : vector<8x256xf32>
    %36 = vector.broadcast %1 : vector<1x256xf32> to vector<8x256xf32>
    %37 = arith.addf %35, %36 : vector<8x256xf32>
    %38 = math.tanh %37 : vector<8x256xf32>
    %39 = vector.extract_strided_slice %38 {offsets = [0, 0], sizes = [8, 192], strides = [1, 1]} : vector<8x256xf32> to vector<8x192xf32>
    %cst_22 = arith.constant 5.000000e-01 : f32
    %40 = vector.broadcast %cst_22 : f32 to vector<8x192xf32>
    %41 = arith.mulf %40, %39 : vector<8x192xf32>
    %cst_23 = arith.constant 5.000000e-01 : f32
    %42 = vector.broadcast %cst_23 : f32 to vector<8x192xf32>
    %43 = arith.addf %41, %42 : vector<8x192xf32>
    %44 = vector.extract_strided_slice %43 {offsets = [0, 0], sizes = [8, 64], strides = [1, 1]} : vector<8x192xf32> to vector<8x64xf32>
    %45 = vector.extract_strided_slice %43 {offsets = [0, 64], sizes = [8, 64], strides = [1, 1]} : vector<8x192xf32> to vector<8x64xf32>
    %46 = vector.extract_strided_slice %43 {offsets = [0, 128], sizes = [8, 64], strides = [1, 1]} : vector<8x192xf32> to vector<8x64xf32>
    %47 = vector.extract_strided_slice %38 {offsets = [0, 192], sizes = [8, 64], strides = [1, 1]} : vector<8x256xf32> to vector<8x64xf32>
    %48 = arith.mulf %45, %11 : vector<8x64xf32>
    %49 = arith.mulf %44, %47 : vector<8x64xf32>
    %50 = arith.addf %48, %49 : vector<8x64xf32>
    %51 = math.tanh %50 : vector<8x64xf32>
    %52 = arith.mulf %46, %51 : vector<8x64xf32>
    %c64_24 = arith.constant 64 : index
    %c0_25 = arith.constant 0 : index
    %53 = vector.load %arg1[%c64_24, %c0_25] : memref<256x256xf32, #tpu.memory_space<vmem>>, vector<32x128xf32>
    %c8 = arith.constant 8 : index
    %c0_26 = arith.constant 0 : index
    %54 = vector.load %arg4[%c8, %c0_26] : memref<64x128xf32, #tpu.memory_space<vmem>>, vector<8x128xf32>
    %cst_27 = arith.constant dense<0.000000e+00> : vector<8x128xf32>
    %55 = tpu.matmul %30, %53, %cst_27 {dimension_numbers = #tpu.dot_dimension_numbers<[1], [0], [0], [1], [0, 0, 1, 1], [], []>} : vector<8x32xf32>, vector<32x128xf32>, vector<8x128xf32> -> vector<8x128xf32>
    %56 = arith.addf %54, %55 : vector<8x128xf32>
    %57 = math.tanh %56 : vector<8x128xf32>
    %58 = vector.extract_strided_slice %57 {offsets = [0, 0], sizes = [8, 96], strides = [1, 1]} : vector<8x128xf32> to vector<8x96xf32>
    %cst_28 = arith.constant 5.000000e-01 : f32
    %59 = vector.broadcast %cst_28 : f32 to vector<8x96xf32>
    %60 = arith.mulf %59, %58 : vector<8x96xf32>
    %cst_29 = arith.constant 5.000000e-01 : f32
    %61 = vector.broadcast %cst_29 : f32 to vector<8x96xf32>
    %62 = arith.addf %60, %61 : vector<8x96xf32>
    %63 = vector.extract_strided_slice %62 {offsets = [0, 0], sizes = [8, 32], strides = [1, 1]} : vector<8x96xf32> to vector<8x32xf32>
    %64 = vector.extract_strided_slice %62 {offsets = [0, 32], sizes = [8, 32], strides = [1, 1]} : vector<8x96xf32> to vector<8x32xf32>
    %65 = vector.extract_strided_slice %62 {offsets = [0, 64], sizes = [8, 32], strides = [1, 1]} : vector<8x96xf32> to vector<8x32xf32>
    %66 = vector.extract_strided_slice %57 {offsets = [0, 96], sizes = [8, 32], strides = [1, 1]} : vector<8x128xf32> to vector<8x32xf32>
    %67 = arith.mulf %64, %28 : vector<8x32xf32>
    %68 = arith.mulf %63, %66 : vector<8x32xf32>
    %69 = arith.addf %67, %68 : vector<8x32xf32>
    %70 = math.tanh %69 : vector<8x32xf32>
    %71 = arith.mulf %65, %70 : vector<8x32xf32>
    %c96_30 = arith.constant 96 : index
    %c0_31 = arith.constant 0 : index
    %72 = vector.load %arg1[%c96_30, %c0_31] : memref<256x256xf32, #tpu.memory_space<vmem>>, vector<32x256xf32>
    %c128_32 = arith.constant 128 : index
    %c0_33 = arith.constant 0 : index
    %73 = vector.load %arg1[%c128_32, %c0_33] : memref<256x256xf32, #tpu.memory_space<vmem>>, vector<64x256xf32>
    %cst_34 = arith.constant dense<0.000000e+00> : vector<8x256xf32>
    %74 = tpu.matmul %71, %72, %cst_34 {dimension_numbers = #tpu.dot_dimension_numbers<[1], [0], [0], [1], [0, 0, 1, 1], [], []>} : vector<8x32xf32>, vector<32x256xf32>, vector<8x256xf32> -> vector<8x256xf32>
    %cst_35 = arith.constant dense<0.000000e+00> : vector<8x256xf32>
    %75 = tpu.matmul %52, %73, %cst_35 {dimension_numbers = #tpu.dot_dimension_numbers<[1], [0], [0], [1], [0, 0, 1, 1], [], []>} : vector<8x64xf32>, vector<64x256xf32>, vector<8x256xf32> -> vector<8x256xf32>
    %76 = arith.addf %74, %75 : vector<8x256xf32>
    %77 = vector.broadcast %1 : vector<1x256xf32> to vector<8x256xf32>
    %78 = arith.addf %76, %77 : vector<8x256xf32>
    %79 = math.tanh %78 : vector<8x256xf32>
    %80 = vector.extract_strided_slice %79 {offsets = [0, 0], sizes = [8, 192], strides = [1, 1]} : vector<8x256xf32> to vector<8x192xf32>
    %cst_36 = arith.constant 5.000000e-01 : f32
    %81 = vector.broadcast %cst_36 : f32 to vector<8x192xf32>
    %82 = arith.mulf %81, %80 : vector<8x192xf32>
    %cst_37 = arith.constant 5.000000e-01 : f32
    %83 = vector.broadcast %cst_37 : f32 to vector<8x192xf32>
    %84 = arith.addf %82, %83 : vector<8x192xf32>
    %85 = vector.extract_strided_slice %84 {offsets = [0, 0], sizes = [8, 64], strides = [1, 1]} : vector<8x192xf32> to vector<8x64xf32>
    %86 = vector.extract_strided_slice %84 {offsets = [0, 64], sizes = [8, 64], strides = [1, 1]} : vector<8x192xf32> to vector<8x64xf32>
    %87 = vector.extract_strided_slice %84 {offsets = [0, 128], sizes = [8, 64], strides = [1, 1]} : vector<8x192xf32> to vector<8x64xf32>
    %88 = vector.extract_strided_slice %79 {offsets = [0, 192], sizes = [8, 64], strides = [1, 1]} : vector<8x256xf32> to vector<8x64xf32>
    %89 = arith.mulf %86, %50 : vector<8x64xf32>
    %90 = arith.mulf %85, %88 : vector<8x64xf32>
    %91 = arith.addf %89, %90 : vector<8x64xf32>
    %92 = math.tanh %91 : vector<8x64xf32>
    %93 = arith.mulf %87, %92 : vector<8x64xf32>
    %c64_38 = arith.constant 64 : index
    %c0_39 = arith.constant 0 : index
    %94 = vector.load %arg1[%c64_38, %c0_39] : memref<256x256xf32, #tpu.memory_space<vmem>>, vector<32x128xf32>
    %c16 = arith.constant 16 : index
    %c0_40 = arith.constant 0 : index
    %95 = vector.load %arg4[%c16, %c0_40] : memref<64x128xf32, #tpu.memory_space<vmem>>, vector<8x128xf32>
    %cst_41 = arith.constant dense<0.000000e+00> : vector<8x128xf32>
    %96 = tpu.matmul %71, %94, %cst_41 {dimension_numbers = #tpu.dot_dimension_numbers<[1], [0], [0], [1], [0, 0, 1, 1], [], []>} : vector<8x32xf32>, vector<32x128xf32>, vector<8x128xf32> -> vector<8x128xf32>
    %97 = arith.addf %95, %96 : vector<8x128xf32>
    %98 = math.tanh %97 : vector<8x128xf32>
    %99 = vector.extract_strided_slice %98 {offsets = [0, 0], sizes = [8, 96], strides = [1, 1]} : vector<8x128xf32> to vector<8x96xf32>
    %cst_42 = arith.constant 5.000000e-01 : f32
    %100 = vector.broadcast %cst_42 : f32 to vector<8x96xf32>
    %101 = arith.mulf %100, %99 : vector<8x96xf32>
    %cst_43 = arith.constant 5.000000e-01 : f32
    %102 = vector.broadcast %cst_43 : f32 to vector<8x96xf32>
    %103 = arith.addf %101, %102 : vector<8x96xf32>
    %104 = vector.extract_strided_slice %103 {offsets = [0, 0], sizes = [8, 32], strides = [1, 1]} : vector<8x96xf32> to vector<8x32xf32>
    %105 = vector.extract_strided_slice %103 {offsets = [0, 32], sizes = [8, 32], strides = [1, 1]} : vector<8x96xf32> to vector<8x32xf32>
    %106 = vector.extract_strided_slice %103 {offsets = [0, 64], sizes = [8, 32], strides = [1, 1]} : vector<8x96xf32> to vector<8x32xf32>
    %107 = vector.extract_strided_slice %98 {offsets = [0, 96], sizes = [8, 32], strides = [1, 1]} : vector<8x128xf32> to vector<8x32xf32>
    %108 = arith.mulf %105, %69 : vector<8x32xf32>
    %109 = arith.mulf %104, %107 : vector<8x32xf32>
    %110 = arith.addf %108, %109 : vector<8x32xf32>
    %111 = math.tanh %110 : vector<8x32xf32>
    %112 = arith.mulf %106, %111 : vector<8x32xf32>
    %c96_44 = arith.constant 96 : index
    %c0_45 = arith.constant 0 : index
    %113 = vector.load %arg1[%c96_44, %c0_45] : memref<256x256xf32, #tpu.memory_space<vmem>>, vector<32x256xf32>
    %c128_46 = arith.constant 128 : index
    %c0_47 = arith.constant 0 : index
    %114 = vector.load %arg1[%c128_46, %c0_47] : memref<256x256xf32, #tpu.memory_space<vmem>>, vector<64x256xf32>
    %cst_48 = arith.constant dense<0.000000e+00> : vector<8x256xf32>
    %115 = tpu.matmul %112, %113, %cst_48 {dimension_numbers = #tpu.dot_dimension_numbers<[1], [0], [0], [1], [0, 0, 1, 1], [], []>} : vector<8x32xf32>, vector<32x256xf32>, vector<8x256xf32> -> vector<8x256xf32>
    %cst_49 = arith.constant dense<0.000000e+00> : vector<8x256xf32>
    %116 = tpu.matmul %93, %114, %cst_49 {dimension_numbers = #tpu.dot_dimension_numbers<[1], [0], [0], [1], [0, 0, 1, 1], [], []>} : vector<8x64xf32>, vector<64x256xf32>, vector<8x256xf32> -> vector<8x256xf32>
    %117 = arith.addf %115, %116 : vector<8x256xf32>
    %118 = vector.broadcast %1 : vector<1x256xf32> to vector<8x256xf32>
    %119 = arith.addf %117, %118 : vector<8x256xf32>
    %120 = math.tanh %119 : vector<8x256xf32>
    %121 = vector.extract_strided_slice %120 {offsets = [0, 0], sizes = [8, 192], strides = [1, 1]} : vector<8x256xf32> to vector<8x192xf32>
    %cst_50 = arith.constant 5.000000e-01 : f32
    %122 = vector.broadcast %cst_50 : f32 to vector<8x192xf32>
    %123 = arith.mulf %122, %121 : vector<8x192xf32>
    %cst_51 = arith.constant 5.000000e-01 : f32
    %124 = vector.broadcast %cst_51 : f32 to vector<8x192xf32>
    %125 = arith.addf %123, %124 : vector<8x192xf32>
    %126 = vector.extract_strided_slice %125 {offsets = [0, 0], sizes = [8, 64], strides = [1, 1]} : vector<8x192xf32> to vector<8x64xf32>
    %127 = vector.extract_strided_slice %125 {offsets = [0, 64], sizes = [8, 64], strides = [1, 1]} : vector<8x192xf32> to vector<8x64xf32>
    %128 = vector.extract_strided_slice %125 {offsets = [0, 128], sizes = [8, 64], strides = [1, 1]} : vector<8x192xf32> to vector<8x64xf32>
    %129 = vector.extract_strided_slice %120 {offsets = [0, 192], sizes = [8, 64], strides = [1, 1]} : vector<8x256xf32> to vector<8x64xf32>
    %130 = arith.mulf %127, %91 : vector<8x64xf32>
    %131 = arith.mulf %126, %129 : vector<8x64xf32>
    %132 = arith.addf %130, %131 : vector<8x64xf32>
    %133 = math.tanh %132 : vector<8x64xf32>
    %134 = arith.mulf %128, %133 : vector<8x64xf32>
    %c64_52 = arith.constant 64 : index
    %c0_53 = arith.constant 0 : index
    %135 = vector.load %arg1[%c64_52, %c0_53] : memref<256x256xf32, #tpu.memory_space<vmem>>, vector<32x128xf32>
    %c24 = arith.constant 24 : index
    %c0_54 = arith.constant 0 : index
    %136 = vector.load %arg4[%c24, %c0_54] : memref<64x128xf32, #tpu.memory_space<vmem>>, vector<8x128xf32>
    %cst_55 = arith.constant dense<0.000000e+00> : vector<8x128xf32>
    %137 = tpu.matmul %112, %135, %cst_55 {dimension_numbers = #tpu.dot_dimension_numbers<[1], [0], [0], [1], [0, 0, 1, 1], [], []>} : vector<8x32xf32>, vector<32x128xf32>, vector<8x128xf32> -> vector<8x128xf32>
    %138 = arith.addf %136, %137 : vector<8x128xf32>
    %139 = math.tanh %138 : vector<8x128xf32>
    %140 = vector.extract_strided_slice %139 {offsets = [0, 0], sizes = [8, 96], strides = [1, 1]} : vector<8x128xf32> to vector<8x96xf32>
    %cst_56 = arith.constant 5.000000e-01 : f32
    %141 = vector.broadcast %cst_56 : f32 to vector<8x96xf32>
    %142 = arith.mulf %141, %140 : vector<8x96xf32>
    %cst_57 = arith.constant 5.000000e-01 : f32
    %143 = vector.broadcast %cst_57 : f32 to vector<8x96xf32>
    %144 = arith.addf %142, %143 : vector<8x96xf32>
    %145 = vector.extract_strided_slice %144 {offsets = [0, 0], sizes = [8, 32], strides = [1, 1]} : vector<8x96xf32> to vector<8x32xf32>
    %146 = vector.extract_strided_slice %144 {offsets = [0, 32], sizes = [8, 32], strides = [1, 1]} : vector<8x96xf32> to vector<8x32xf32>
    %147 = vector.extract_strided_slice %144 {offsets = [0, 64], sizes = [8, 32], strides = [1, 1]} : vector<8x96xf32> to vector<8x32xf32>
    %148 = vector.extract_strided_slice %139 {offsets = [0, 96], sizes = [8, 32], strides = [1, 1]} : vector<8x128xf32> to vector<8x32xf32>
    %149 = arith.mulf %146, %110 : vector<8x32xf32>
    %150 = arith.mulf %145, %148 : vector<8x32xf32>
    %151 = arith.addf %149, %150 : vector<8x32xf32>
    %152 = math.tanh %151 : vector<8x32xf32>
    %153 = arith.mulf %147, %152 : vector<8x32xf32>
    %c96_58 = arith.constant 96 : index
    %c0_59 = arith.constant 0 : index
    %154 = vector.load %arg1[%c96_58, %c0_59] : memref<256x256xf32, #tpu.memory_space<vmem>>, vector<32x256xf32>
    %c128_60 = arith.constant 128 : index
    %c0_61 = arith.constant 0 : index
    %155 = vector.load %arg1[%c128_60, %c0_61] : memref<256x256xf32, #tpu.memory_space<vmem>>, vector<64x256xf32>
    %cst_62 = arith.constant dense<0.000000e+00> : vector<8x256xf32>
    %156 = tpu.matmul %153, %154, %cst_62 {dimension_numbers = #tpu.dot_dimension_numbers<[1], [0], [0], [1], [0, 0, 1, 1], [], []>} : vector<8x32xf32>, vector<32x256xf32>, vector<8x256xf32> -> vector<8x256xf32>
    %cst_63 = arith.constant dense<0.000000e+00> : vector<8x256xf32>
    %157 = tpu.matmul %134, %155, %cst_63 {dimension_numbers = #tpu.dot_dimension_numbers<[1], [0], [0], [1], [0, 0, 1, 1], [], []>} : vector<8x64xf32>, vector<64x256xf32>, vector<8x256xf32> -> vector<8x256xf32>
    %158 = arith.addf %156, %157 : vector<8x256xf32>
    %159 = vector.broadcast %1 : vector<1x256xf32> to vector<8x256xf32>
    %160 = arith.addf %158, %159 : vector<8x256xf32>
    %161 = math.tanh %160 : vector<8x256xf32>
    %162 = vector.extract_strided_slice %161 {offsets = [0, 0], sizes = [8, 192], strides = [1, 1]} : vector<8x256xf32> to vector<8x192xf32>
    %cst_64 = arith.constant 5.000000e-01 : f32
    %163 = vector.broadcast %cst_64 : f32 to vector<8x192xf32>
    %164 = arith.mulf %163, %162 : vector<8x192xf32>
    %cst_65 = arith.constant 5.000000e-01 : f32
    %165 = vector.broadcast %cst_65 : f32 to vector<8x192xf32>
    %166 = arith.addf %164, %165 : vector<8x192xf32>
    %167 = vector.extract_strided_slice %166 {offsets = [0, 0], sizes = [8, 64], strides = [1, 1]} : vector<8x192xf32> to vector<8x64xf32>
    %168 = vector.extract_strided_slice %166 {offsets = [0, 64], sizes = [8, 64], strides = [1, 1]} : vector<8x192xf32> to vector<8x64xf32>
    %169 = vector.extract_strided_slice %166 {offsets = [0, 128], sizes = [8, 64], strides = [1, 1]} : vector<8x192xf32> to vector<8x64xf32>
    %170 = vector.extract_strided_slice %161 {offsets = [0, 192], sizes = [8, 64], strides = [1, 1]} : vector<8x256xf32> to vector<8x64xf32>
    %171 = arith.mulf %168, %132 : vector<8x64xf32>
    %172 = arith.mulf %167, %170 : vector<8x64xf32>
    %173 = arith.addf %171, %172 : vector<8x64xf32>
    %174 = math.tanh %173 : vector<8x64xf32>
    %175 = arith.mulf %169, %174 : vector<8x64xf32>
    %c64_66 = arith.constant 64 : index
    %c0_67 = arith.constant 0 : index
    %176 = vector.load %arg1[%c64_66, %c0_67] : memref<256x256xf32, #tpu.memory_space<vmem>>, vector<32x128xf32>
    %c32 = arith.constant 32 : index
    %c0_68 = arith.constant 0 : index
    %177 = vector.load %arg4[%c32, %c0_68] : memref<64x128xf32, #tpu.memory_space<vmem>>, vector<8x128xf32>
    %cst_69 = arith.constant dense<0.000000e+00> : vector<8x128xf32>
    %178 = tpu.matmul %153, %176, %cst_69 {dimension_numbers = #tpu.dot_dimension_numbers<[1], [0], [0], [1], [0, 0, 1, 1], [], []>} : vector<8x32xf32>, vector<32x128xf32>, vector<8x128xf32> -> vector<8x128xf32>
    %179 = arith.addf %177, %178 : vector<8x128xf32>
    %180 = math.tanh %179 : vector<8x128xf32>
    %181 = vector.extract_strided_slice %180 {offsets = [0, 0], sizes = [8, 96], strides = [1, 1]} : vector<8x128xf32> to vector<8x96xf32>
    %cst_70 = arith.constant 5.000000e-01 : f32
    %182 = vector.broadcast %cst_70 : f32 to vector<8x96xf32>
    %183 = arith.mulf %182, %181 : vector<8x96xf32>
    %cst_71 = arith.constant 5.000000e-01 : f32
    %184 = vector.broadcast %cst_71 : f32 to vector<8x96xf32>
    %185 = arith.addf %183, %184 : vector<8x96xf32>
    %186 = vector.extract_strided_slice %185 {offsets = [0, 0], sizes = [8, 32], strides = [1, 1]} : vector<8x96xf32> to vector<8x32xf32>
    %187 = vector.extract_strided_slice %185 {offsets = [0, 32], sizes = [8, 32], strides = [1, 1]} : vector<8x96xf32> to vector<8x32xf32>
    %188 = vector.extract_strided_slice %185 {offsets = [0, 64], sizes = [8, 32], strides = [1, 1]} : vector<8x96xf32> to vector<8x32xf32>
    %189 = vector.extract_strided_slice %180 {offsets = [0, 96], sizes = [8, 32], strides = [1, 1]} : vector<8x128xf32> to vector<8x32xf32>
    %190 = arith.mulf %187, %151 : vector<8x32xf32>
    %191 = arith.mulf %186, %189 : vector<8x32xf32>
    %192 = arith.addf %190, %191 : vector<8x32xf32>
    %193 = math.tanh %192 : vector<8x32xf32>
    %194 = arith.mulf %188, %193 : vector<8x32xf32>
    %c96_72 = arith.constant 96 : index
    %c0_73 = arith.constant 0 : index
    %195 = vector.load %arg1[%c96_72, %c0_73] : memref<256x256xf32, #tpu.memory_space<vmem>>, vector<32x256xf32>
    %c128_74 = arith.constant 128 : index
    %c0_75 = arith.constant 0 : index
    %196 = vector.load %arg1[%c128_74, %c0_75] : memref<256x256xf32, #tpu.memory_space<vmem>>, vector<64x256xf32>
    %cst_76 = arith.constant dense<0.000000e+00> : vector<8x256xf32>
    %197 = tpu.matmul %194, %195, %cst_76 {dimension_numbers = #tpu.dot_dimension_numbers<[1], [0], [0], [1], [0, 0, 1, 1], [], []>} : vector<8x32xf32>, vector<32x256xf32>, vector<8x256xf32> -> vector<8x256xf32>
    %cst_77 = arith.constant dense<0.000000e+00> : vector<8x256xf32>
    %198 = tpu.matmul %175, %196, %cst_77 {dimension_numbers = #tpu.dot_dimension_numbers<[1], [0], [0], [1], [0, 0, 1, 1], [], []>} : vector<8x64xf32>, vector<64x256xf32>, vector<8x256xf32> -> vector<8x256xf32>
    %199 = arith.addf %197, %198 : vector<8x256xf32>
    %200 = vector.broadcast %1 : vector<1x256xf32> to vector<8x256xf32>
    %201 = arith.addf %199, %200 : vector<8x256xf32>
    %202 = math.tanh %201 : vector<8x256xf32>
    %203 = vector.extract_strided_slice %202 {offsets = [0, 0], sizes = [8, 192], strides = [1, 1]} : vector<8x256xf32> to vector<8x192xf32>
    %cst_78 = arith.constant 5.000000e-01 : f32
    %204 = vector.broadcast %cst_78 : f32 to vector<8x192xf32>
    %205 = arith.mulf %204, %203 : vector<8x192xf32>
    %cst_79 = arith.constant 5.000000e-01 : f32
    %206 = vector.broadcast %cst_79 : f32 to vector<8x192xf32>
    %207 = arith.addf %205, %206 : vector<8x192xf32>
    %208 = vector.extract_strided_slice %207 {offsets = [0, 0], sizes = [8, 64], strides = [1, 1]} : vector<8x192xf32> to vector<8x64xf32>
    %209 = vector.extract_strided_slice %207 {offsets = [0, 64], sizes = [8, 64], strides = [1, 1]} : vector<8x192xf32> to vector<8x64xf32>
    %210 = vector.extract_strided_slice %207 {offsets = [0, 128], sizes = [8, 64], strides = [1, 1]} : vector<8x192xf32> to vector<8x64xf32>
    %211 = vector.extract_strided_slice %202 {offsets = [0, 192], sizes = [8, 64], strides = [1, 1]} : vector<8x256xf32> to vector<8x64xf32>
    %212 = arith.mulf %209, %173 : vector<8x64xf32>
    %213 = arith.mulf %208, %211 : vector<8x64xf32>
    %214 = arith.addf %212, %213 : vector<8x64xf32>
    %215 = math.tanh %214 : vector<8x64xf32>
    %216 = arith.mulf %210, %215 : vector<8x64xf32>
    %c64_80 = arith.constant 64 : index
    %c0_81 = arith.constant 0 : index
    %217 = vector.load %arg1[%c64_80, %c0_81] : memref<256x256xf32, #tpu.memory_space<vmem>>, vector<32x128xf32>
    %c40 = arith.constant 40 : index
    %c0_82 = arith.constant 0 : index
    %218 = vector.load %arg4[%c40, %c0_82] : memref<64x128xf32, #tpu.memory_space<vmem>>, vector<8x128xf32>
    %cst_83 = arith.constant dense<0.000000e+00> : vector<8x128xf32>
    %219 = tpu.matmul %194, %217, %cst_83 {dimension_numbers = #tpu.dot_dimension_numbers<[1], [0], [0], [1], [0, 0, 1, 1], [], []>} : vector<8x32xf32>, vector<32x128xf32>, vector<8x128xf32> -> vector<8x128xf32>
    %220 = arith.addf %218, %219 : vector<8x128xf32>
    %221 = math.tanh %220 : vector<8x128xf32>
    %222 = vector.extract_strided_slice %221 {offsets = [0, 0], sizes = [8, 96], strides = [1, 1]} : vector<8x128xf32> to vector<8x96xf32>
    %cst_84 = arith.constant 5.000000e-01 : f32
    %223 = vector.broadcast %cst_84 : f32 to vector<8x96xf32>
    %224 = arith.mulf %223, %222 : vector<8x96xf32>
    %cst_85 = arith.constant 5.000000e-01 : f32
    %225 = vector.broadcast %cst_85 : f32 to vector<8x96xf32>
    %226 = arith.addf %224, %225 : vector<8x96xf32>
    %227 = vector.extract_strided_slice %226 {offsets = [0, 0], sizes = [8, 32], strides = [1, 1]} : vector<8x96xf32> to vector<8x32xf32>
    %228 = vector.extract_strided_slice %226 {offsets = [0, 32], sizes = [8, 32], strides = [1, 1]} : vector<8x96xf32> to vector<8x32xf32>
    %229 = vector.extract_strided_slice %226 {offsets = [0, 64], sizes = [8, 32], strides = [1, 1]} : vector<8x96xf32> to vector<8x32xf32>
    %230 = vector.extract_strided_slice %221 {offsets = [0, 96], sizes = [8, 32], strides = [1, 1]} : vector<8x128xf32> to vector<8x32xf32>
    %231 = arith.mulf %228, %192 : vector<8x32xf32>
    %232 = arith.mulf %227, %230 : vector<8x32xf32>
    %233 = arith.addf %231, %232 : vector<8x32xf32>
    %234 = math.tanh %233 : vector<8x32xf32>
    %235 = arith.mulf %229, %234 : vector<8x32xf32>
    %c96_86 = arith.constant 96 : index
    %c0_87 = arith.constant 0 : index
    %236 = vector.load %arg1[%c96_86, %c0_87] : memref<256x256xf32, #tpu.memory_space<vmem>>, vector<32x256xf32>
    %c128_88 = arith.constant 128 : index
    %c0_89 = arith.constant 0 : index
    %237 = vector.load %arg1[%c128_88, %c0_89] : memref<256x256xf32, #tpu.memory_space<vmem>>, vector<64x256xf32>
    %cst_90 = arith.constant dense<0.000000e+00> : vector<8x256xf32>
    %238 = tpu.matmul %235, %236, %cst_90 {dimension_numbers = #tpu.dot_dimension_numbers<[1], [0], [0], [1], [0, 0, 1, 1], [], []>} : vector<8x32xf32>, vector<32x256xf32>, vector<8x256xf32> -> vector<8x256xf32>
    %cst_91 = arith.constant dense<0.000000e+00> : vector<8x256xf32>
    %239 = tpu.matmul %216, %237, %cst_91 {dimension_numbers = #tpu.dot_dimension_numbers<[1], [0], [0], [1], [0, 0, 1, 1], [], []>} : vector<8x64xf32>, vector<64x256xf32>, vector<8x256xf32> -> vector<8x256xf32>
    %240 = arith.addf %238, %239 : vector<8x256xf32>
    %241 = vector.broadcast %1 : vector<1x256xf32> to vector<8x256xf32>
    %242 = arith.addf %240, %241 : vector<8x256xf32>
    %243 = math.tanh %242 : vector<8x256xf32>
    %244 = vector.extract_strided_slice %243 {offsets = [0, 0], sizes = [8, 192], strides = [1, 1]} : vector<8x256xf32> to vector<8x192xf32>
    %cst_92 = arith.constant 5.000000e-01 : f32
    %245 = vector.broadcast %cst_92 : f32 to vector<8x192xf32>
    %246 = arith.mulf %245, %244 : vector<8x192xf32>
    %cst_93 = arith.constant 5.000000e-01 : f32
    %247 = vector.broadcast %cst_93 : f32 to vector<8x192xf32>
    %248 = arith.addf %246, %247 : vector<8x192xf32>
    %249 = vector.extract_strided_slice %248 {offsets = [0, 0], sizes = [8, 64], strides = [1, 1]} : vector<8x192xf32> to vector<8x64xf32>
    %250 = vector.extract_strided_slice %248 {offsets = [0, 64], sizes = [8, 64], strides = [1, 1]} : vector<8x192xf32> to vector<8x64xf32>
    %251 = vector.extract_strided_slice %248 {offsets = [0, 128], sizes = [8, 64], strides = [1, 1]} : vector<8x192xf32> to vector<8x64xf32>
    %252 = vector.extract_strided_slice %243 {offsets = [0, 192], sizes = [8, 64], strides = [1, 1]} : vector<8x256xf32> to vector<8x64xf32>
    %253 = arith.mulf %250, %214 : vector<8x64xf32>
    %254 = arith.mulf %249, %252 : vector<8x64xf32>
    %255 = arith.addf %253, %254 : vector<8x64xf32>
    %256 = math.tanh %255 : vector<8x64xf32>
    %257 = arith.mulf %251, %256 : vector<8x64xf32>
    %c64_94 = arith.constant 64 : index
    %c0_95 = arith.constant 0 : index
    %258 = vector.load %arg1[%c64_94, %c0_95] : memref<256x256xf32, #tpu.memory_space<vmem>>, vector<32x128xf32>
    %c48 = arith.constant 48 : index
    %c0_96 = arith.constant 0 : index
    %259 = vector.load %arg4[%c48, %c0_96] : memref<64x128xf32, #tpu.memory_space<vmem>>, vector<8x128xf32>
    %cst_97 = arith.constant dense<0.000000e+00> : vector<8x128xf32>
    %260 = tpu.matmul %235, %258, %cst_97 {dimension_numbers = #tpu.dot_dimension_numbers<[1], [0], [0], [1], [0, 0, 1, 1], [], []>} : vector<8x32xf32>, vector<32x128xf32>, vector<8x128xf32> -> vector<8x128xf32>
    %261 = arith.addf %259, %260 : vector<8x128xf32>
    %262 = math.tanh %261 : vector<8x128xf32>
    %263 = vector.extract_strided_slice %262 {offsets = [0, 0], sizes = [8, 96], strides = [1, 1]} : vector<8x128xf32> to vector<8x96xf32>
    %cst_98 = arith.constant 5.000000e-01 : f32
    %264 = vector.broadcast %cst_98 : f32 to vector<8x96xf32>
    %265 = arith.mulf %264, %263 : vector<8x96xf32>
    %cst_99 = arith.constant 5.000000e-01 : f32
    %266 = vector.broadcast %cst_99 : f32 to vector<8x96xf32>
    %267 = arith.addf %265, %266 : vector<8x96xf32>
    %268 = vector.extract_strided_slice %267 {offsets = [0, 0], sizes = [8, 32], strides = [1, 1]} : vector<8x96xf32> to vector<8x32xf32>
    %269 = vector.extract_strided_slice %267 {offsets = [0, 32], sizes = [8, 32], strides = [1, 1]} : vector<8x96xf32> to vector<8x32xf32>
    %270 = vector.extract_strided_slice %267 {offsets = [0, 64], sizes = [8, 32], strides = [1, 1]} : vector<8x96xf32> to vector<8x32xf32>
    %271 = vector.extract_strided_slice %262 {offsets = [0, 96], sizes = [8, 32], strides = [1, 1]} : vector<8x128xf32> to vector<8x32xf32>
    %272 = arith.mulf %269, %233 : vector<8x32xf32>
    %273 = arith.mulf %268, %271 : vector<8x32xf32>
    %274 = arith.addf %272, %273 : vector<8x32xf32>
    %275 = math.tanh %274 : vector<8x32xf32>
    %276 = arith.mulf %270, %275 : vector<8x32xf32>
    %c96_100 = arith.constant 96 : index
    %c0_101 = arith.constant 0 : index
    %277 = vector.load %arg1[%c96_100, %c0_101] : memref<256x256xf32, #tpu.memory_space<vmem>>, vector<32x256xf32>
    %c128_102 = arith.constant 128 : index
    %c0_103 = arith.constant 0 : index
    %278 = vector.load %arg1[%c128_102, %c0_103] : memref<256x256xf32, #tpu.memory_space<vmem>>, vector<64x256xf32>
    %cst_104 = arith.constant dense<0.000000e+00> : vector<8x256xf32>
    %279 = tpu.matmul %276, %277, %cst_104 {dimension_numbers = #tpu.dot_dimension_numbers<[1], [0], [0], [1], [0, 0, 1, 1], [], []>} : vector<8x32xf32>, vector<32x256xf32>, vector<8x256xf32> -> vector<8x256xf32>
    %cst_105 = arith.constant dense<0.000000e+00> : vector<8x256xf32>
    %280 = tpu.matmul %257, %278, %cst_105 {dimension_numbers = #tpu.dot_dimension_numbers<[1], [0], [0], [1], [0, 0, 1, 1], [], []>} : vector<8x64xf32>, vector<64x256xf32>, vector<8x256xf32> -> vector<8x256xf32>
    %281 = arith.addf %279, %280 : vector<8x256xf32>
    %282 = vector.broadcast %1 : vector<1x256xf32> to vector<8x256xf32>
    %283 = arith.addf %281, %282 : vector<8x256xf32>
    %284 = math.tanh %283 : vector<8x256xf32>
    %285 = vector.extract_strided_slice %284 {offsets = [0, 0], sizes = [8, 192], strides = [1, 1]} : vector<8x256xf32> to vector<8x192xf32>
    %cst_106 = arith.constant 5.000000e-01 : f32
    %286 = vector.broadcast %cst_106 : f32 to vector<8x192xf32>
    %287 = arith.mulf %286, %285 : vector<8x192xf32>
    %cst_107 = arith.constant 5.000000e-01 : f32
    %288 = vector.broadcast %cst_107 : f32 to vector<8x192xf32>
    %289 = arith.addf %287, %288 : vector<8x192xf32>
    %290 = vector.extract_strided_slice %289 {offsets = [0, 0], sizes = [8, 64], strides = [1, 1]} : vector<8x192xf32> to vector<8x64xf32>
    %291 = vector.extract_strided_slice %289 {offsets = [0, 64], sizes = [8, 64], strides = [1, 1]} : vector<8x192xf32> to vector<8x64xf32>
    %292 = vector.extract_strided_slice %289 {offsets = [0, 128], sizes = [8, 64], strides = [1, 1]} : vector<8x192xf32> to vector<8x64xf32>
    %293 = vector.extract_strided_slice %284 {offsets = [0, 192], sizes = [8, 64], strides = [1, 1]} : vector<8x256xf32> to vector<8x64xf32>
    %294 = arith.mulf %291, %255 : vector<8x64xf32>
    %295 = arith.mulf %290, %293 : vector<8x64xf32>
    %296 = arith.addf %294, %295 : vector<8x64xf32>
    %297 = math.tanh %296 : vector<8x64xf32>
    %298 = arith.mulf %292, %297 : vector<8x64xf32>
    %c64_108 = arith.constant 64 : index
    %c0_109 = arith.constant 0 : index
    %299 = vector.load %arg1[%c64_108, %c0_109] : memref<256x256xf32, #tpu.memory_space<vmem>>, vector<32x128xf32>
    %c56 = arith.constant 56 : index
    %c0_110 = arith.constant 0 : index
    %300 = vector.load %arg4[%c56, %c0_110] : memref<64x128xf32, #tpu.memory_space<vmem>>, vector<8x128xf32>
    %cst_111 = arith.constant dense<0.000000e+00> : vector<8x128xf32>
    %301 = tpu.matmul %276, %299, %cst_111 {dimension_numbers = #tpu.dot_dimension_numbers<[1], [0], [0], [1], [0, 0, 1, 1], [], []>} : vector<8x32xf32>, vector<32x128xf32>, vector<8x128xf32> -> vector<8x128xf32>
    %302 = arith.addf %300, %301 : vector<8x128xf32>
    %303 = math.tanh %302 : vector<8x128xf32>
    %304 = vector.extract_strided_slice %303 {offsets = [0, 0], sizes = [8, 96], strides = [1, 1]} : vector<8x128xf32> to vector<8x96xf32>
    %cst_112 = arith.constant 5.000000e-01 : f32
    %305 = vector.broadcast %cst_112 : f32 to vector<8x96xf32>
    %306 = arith.mulf %305, %304 : vector<8x96xf32>
    %cst_113 = arith.constant 5.000000e-01 : f32
    %307 = vector.broadcast %cst_113 : f32 to vector<8x96xf32>
    %308 = arith.addf %306, %307 : vector<8x96xf32>
    %309 = vector.extract_strided_slice %308 {offsets = [0, 0], sizes = [8, 32], strides = [1, 1]} : vector<8x96xf32> to vector<8x32xf32>
    %310 = vector.extract_strided_slice %308 {offsets = [0, 32], sizes = [8, 32], strides = [1, 1]} : vector<8x96xf32> to vector<8x32xf32>
    %311 = vector.extract_strided_slice %308 {offsets = [0, 64], sizes = [8, 32], strides = [1, 1]} : vector<8x96xf32> to vector<8x32xf32>
    %312 = vector.extract_strided_slice %303 {offsets = [0, 96], sizes = [8, 32], strides = [1, 1]} : vector<8x128xf32> to vector<8x32xf32>
    %313 = arith.mulf %310, %274 : vector<8x32xf32>
    %314 = arith.mulf %309, %312 : vector<8x32xf32>
    %315 = arith.addf %313, %314 : vector<8x32xf32>
    %316 = math.tanh %315 : vector<8x32xf32>
    %317 = arith.mulf %311, %316 : vector<8x32xf32>
    %c96_114 = arith.constant 96 : index
    %c0_115 = arith.constant 0 : index
    %318 = vector.load %arg1[%c96_114, %c0_115] : memref<256x256xf32, #tpu.memory_space<vmem>>, vector<32x256xf32>
    %c128_116 = arith.constant 128 : index
    %c0_117 = arith.constant 0 : index
    %319 = vector.load %arg1[%c128_116, %c0_117] : memref<256x256xf32, #tpu.memory_space<vmem>>, vector<64x256xf32>
    %cst_118 = arith.constant dense<0.000000e+00> : vector<8x256xf32>
    %320 = tpu.matmul %317, %318, %cst_118 {dimension_numbers = #tpu.dot_dimension_numbers<[1], [0], [0], [1], [0, 0, 1, 1], [], []>} : vector<8x32xf32>, vector<32x256xf32>, vector<8x256xf32> -> vector<8x256xf32>
    %cst_119 = arith.constant dense<0.000000e+00> : vector<8x256xf32>
    %321 = tpu.matmul %298, %319, %cst_119 {dimension_numbers = #tpu.dot_dimension_numbers<[1], [0], [0], [1], [0, 0, 1, 1], [], []>} : vector<8x64xf32>, vector<64x256xf32>, vector<8x256xf32> -> vector<8x256xf32>
    %322 = arith.addf %320, %321 : vector<8x256xf32>
    %323 = vector.broadcast %1 : vector<1x256xf32> to vector<8x256xf32>
    %324 = arith.addf %322, %323 : vector<8x256xf32>
    %325 = math.tanh %324 : vector<8x256xf32>
    %326 = vector.extract_strided_slice %325 {offsets = [0, 0], sizes = [8, 192], strides = [1, 1]} : vector<8x256xf32> to vector<8x192xf32>
    %cst_120 = arith.constant 5.000000e-01 : f32
    %327 = vector.broadcast %cst_120 : f32 to vector<8x192xf32>
    %328 = arith.mulf %327, %326 : vector<8x192xf32>
    %cst_121 = arith.constant 5.000000e-01 : f32
    %329 = vector.broadcast %cst_121 : f32 to vector<8x192xf32>
    %330 = arith.addf %328, %329 : vector<8x192xf32>
    %331 = vector.extract_strided_slice %330 {offsets = [0, 0], sizes = [8, 64], strides = [1, 1]} : vector<8x192xf32> to vector<8x64xf32>
    %332 = vector.extract_strided_slice %330 {offsets = [0, 64], sizes = [8, 64], strides = [1, 1]} : vector<8x192xf32> to vector<8x64xf32>
    %333 = vector.extract_strided_slice %330 {offsets = [0, 128], sizes = [8, 64], strides = [1, 1]} : vector<8x192xf32> to vector<8x64xf32>
    %334 = vector.extract_strided_slice %325 {offsets = [0, 192], sizes = [8, 64], strides = [1, 1]} : vector<8x256xf32> to vector<8x64xf32>
    %335 = arith.mulf %332, %296 : vector<8x64xf32>
    %336 = arith.mulf %331, %334 : vector<8x64xf32>
    %337 = arith.addf %335, %336 : vector<8x64xf32>
    %338 = math.tanh %337 : vector<8x64xf32>
    %339 = arith.mulf %333, %338 : vector<8x64xf32>
    %c192 = arith.constant 192 : index
    %c0_122 = arith.constant 0 : index
    %340 = vector.load %arg1[%c192, %c0_122] : memref<256x256xf32, #tpu.memory_space<vmem>>, vector<64x32xf32>
    %c2 = arith.constant 2 : index
    %c0_123 = arith.constant 0 : index
    %341 = vector.load %arg2[%c2, %c0_123] : memref<8x256xf32, #tpu.memory_space<vmem>>, vector<1x32xf32>
    %cst_124 = arith.constant dense<0.000000e+00> : vector<8x32xf32>
    %342 = tpu.matmul %339, %340, %cst_124 {dimension_numbers = #tpu.dot_dimension_numbers<[1], [0], [0], [1], [0, 0, 1, 1], [], []>} : vector<8x64xf32>, vector<64x32xf32>, vector<8x32xf32> -> vector<8x32xf32>
    %343 = vector.broadcast %341 : vector<1x32xf32> to vector<8x32xf32>
    %344 = arith.addf %342, %343 : vector<8x32xf32>
    %c0_125 = arith.constant 0 : index
    %c0_126 = arith.constant 0 : index
    %345 = vector.load %arg3[%c0_125, %c0_126] : memref<8x32xf32, #tpu.memory_space<vmem>>, vector<8x32xf32>
    tpu.vector_store %arg3[%c0_125, %c0_126], %344 {strides = array<i32>} : memref<8x32xf32, #tpu.memory_space<vmem>>, vector<8x32xf32>,
    return
  }
}

</mosaic_0001>

<bundles_post_ra>
// kernel: tpu_custom_call.1
= control target key start
LH: loop header
LB: loop body
LE: loop exit
PB: predicated region body
PF: predicated region fallthrough
CT: control target
= control target key end

     0   :  { %8 = vsyncpa [#allocation4], 0  ;;  %s3553_s0 = inlined_call_operand.hbm [shape: f32[64,64], index: 0, kind: input, shape index: {}]   ;;  %s3554_s1 = inlined_call_operand.hbm [shape: f32[256,256], index: 1, kind: input, shape index: {}]   ;;  %s3555_s2 = inlined_call_operand.hbm [shape: f32[8,256], index: 2, kind: input, shape index: {}]   ;;  %s3556_s3 = inlined_call_operand.hbm [shape: f32[8,32], index: 3, kind: output, shape index: {}]  }
   0x1   :  { %9 = vsyncpa [#allocation7], 0 }
   0x2   :  { %10 = vsyncpa [#allocation5], 0  ;;  %s2926_s12 = smov [#allocation6]  }
   0x3   :  { %s28_s13 = sshll.u32 %s2926_s12, 4  ;;  %s29_s13 = int_to_ptr.vmem [resolvable:$true] %s28_s13 }
   0x4   :  { %s2848_s14 = scalar_lea.vmem %s29_s13, 8192  ;;  %p2853_p1 = scmp.lt.s32.totalorder %s29_s13, %s29_s13 }
   0x5   :  { %p2849_p0 = scmp.ne.s32.totalorder %s29_s13, %s2848_s14  ;;  %p2854_p2 = scmp.lt.s32.totalorder %s2848_s14, %s2848_s14 }
   0x7   :  { %p2855_p3 = por %p2854_p2, %p2853_p1 }
   0x9   :  { %p2856_p4 = pnand %p2855_p3, %p2849_p0 }
   0xb   :  { %2859 = shalt.err (!%p2856_p4)
}
   0xc   :  { %s2927_s15 = smov 256   ;;  %s2928_s16 = smov 16  }
   0xd   :  { %34 = dma.hbm_to_vmem [thread:$0]  %s3554_s1, 8192, %s29_s13, [#allocation7], %s2927_s15, %s2927_s15, %s2928_s16  }
   0xe   :  { %s2929_s19 = smov [#allocation3]  }
   0xf   :  { %s16_s20 = sshll.u32 %s2929_s19, 4  ;;  %s17_s20 = int_to_ptr.vmem [resolvable:$true] %s16_s20 }
  0x10   :  { %s2868_s21 = scalar_lea.vmem %s17_s20, 1024  ;;  %p2873_p6 = scmp.lt.s32.totalorder %s17_s20, %s17_s20 }
  0x11   :  { %p2869_p5 = scmp.ne.s32.totalorder %s17_s20, %s2868_s21  ;;  %p2874_p7 = scmp.lt.s32.totalorder %s2868_s21, %s2868_s21 }
  0x13   :  { %p2875_p8 = por %p2874_p7, %p2873_p6 }
  0x15   :  { %p2876_p9 = pnand %p2875_p8, %p2869_p5 }
  0x17   :  { %2879 = shalt.err (!%p2876_p9)
}
  0x18   :  { %s2930_s22 = smov 128   ;;  %s2931_s23 = smov 8  }
  0x19   :  { %22 = dma.hbm_to_vmem [thread:$0]  %s3553_s0, 1024, %s17_s20, [#allocation4], %s2930_s22, %s2930_s22, %s2931_s23  }
  0x1a   :  { %s2932_s26 = smov [#allocation8]  }
  0x1b   :  { %s41_s27 = sshll.u32 %s2932_s26, 4  ;;  %s42_s27 = int_to_ptr.vmem [resolvable:$true] %s41_s27 }
  0x1c   :  { %s2888_s1 = scalar_lea.vmem %s42_s27, 256  ;;  %p2893_p11 = scmp.lt.s32.totalorder %s42_s27, %s42_s27 }
  0x1d   :  { %p2889_p10 = scmp.ne.s32.totalorder %s42_s27, %s2888_s1  ;;  %p2894_p12 = scmp.lt.s32.totalorder %s2888_s1, %s2888_s1 }
  0x1f   :  { %p2895_p13 = por %p2894_p12, %p2893_p11 }
  0x21   :  { %p2896_p0 = pnand %p2895_p13, %p2889_p10 }
  0x23   :  { %2899 = shalt.err (!%p2896_p0)
}
  0x24   :  { %44 = dma.hbm_to_vmem [thread:$0]  %s3555_s2, 256, %s42_s27, [#allocation7]  }
  0x25   :  { %2920 = dma.done.wait [#allocation4], 1024  }
  0x26   :  { %2921 = vsyncadd [#allocation4], 4294966272 }
  0x27   :  { %2922 = dma.done.wait [#allocation7], 8448  }
  0x28   :  { %2923 = vsyncadd [#allocation7], 4294958848  ;;  %v2933_v0 = vmov 0.0   ;;  %vm2934_vm0 = vmmov 0   ;;  %v64_v1 = vld [vmem:[#allocation6 + $0x70] sm:$0xff]  ;;  %v63_v2 = vld [vmem:[#allocation6 + $0x60] sm:$0xff] }
  0x29   :  { %2612 = vmatprep.subr.mxu1 %v2933_v0  ;;  %2620 = vmatprep.mubr.msk.f32.mxu1 %vm2934_vm0, %v2933_v0  ;;  %v62_v3 = vld [vmem:[#allocation6 + $0x50] sm:$0xff]  ;;  %v2972_v5 = vld [vmem:[#allocation6 + $0xa0] sm:$0xff]  ;;  %vm73_vm1 = vcmask 523264   ;;  %v66_v14 = vld [vmem:[#allocation3 + $0x8] sm:$0xff]  ;;  %s2935_s0 = smov 32   ;;  %s2936_s2 = smov 64  }
  0x2a   :  { %2584 = vmatprep.subr.mxu0 %v64_v1  ;;  %v2970_v4 = vld [vmem:[#allocation6 + $0xb0] sm:$0xff]  ;;  %v61_v6 = vld [vmem:[#allocation6 + $0x40] sm:$0xff]  ;;  %v3003_v30 = vld [vmem:[#allocation6 + $0x178] sm:$0xff]  ;;  %vm216_vm2 = vcmask 261120   ;;  %s2937_s30 = smov [#allocation9]  }
  0x2b   :  { %2585 = vmatpush3.msra.mxu0 %v64_v1  ;;  %2613 = vmatpush3.msra.mxu1 %v2970_v4  ;;  %v65_v7 = vld [vmem:[#allocation3] sm:$0xff]  ;;  %v2977_v8 = vld [vmem:[#allocation6 + $0x90] sm:$0xff]  ;;  %v3007_v32 = vld [vmem:[#allocation6 + $0x168] sm:$0xff]  ;;  %v485_v1 = vlaneseq  ;;  %s2478_s4 = sshll.u32 %s2937_s30, 4  ;;  %s2479_s4 = int_to_ptr.vmem [resolvable:$true] %s2478_s4 }
  0x2c   :  { %2586 = vmatprep.subr.mxu0 %v63_v2  ;;  %2614 = vmatprep.subr.mxu1 %v2933_v0  ;;  %v60_v9 = vld [vmem:[#allocation6 + $0x30] sm:$0xff]  ;;  %v2981_v10 = vld [vmem:[#allocation6 + $0x80] sm:$0xff]  ;;  %v3013_v34 = vld [vmem:[#allocation6 + $0x158] sm:$0xff]  ;;  %s2900_s5 = scalar_lea.vmem %s2479_s4, 128  ;;  %p2905_p2 = scmp.lt.s32.totalorder %s2479_s4, %s2479_s4 }
  0x2d   :  { %2587 = vmatpush3.msra.mxu0 %v63_v2  ;;  %2615 = vmatpush3.msra.mxu1 %v2972_v5  ;;  %v59_v11 = vld [vmem:[#allocation6 + $0x20] sm:$0xff]  ;;  %v58_v12 = vld [vmem:[#allocation6 + $0x10] sm:$0xff]  ;;  %v3019_v36 = vld [vmem:[#allocation6 + $0x148] sm:$0xff]  ;;  %v486_v2 = vshrl.u32 %v485_v1, 7  ;;  %p2901_p1 = scmp.ne.s32.totalorder %s2479_s4, %s2900_s5  ;;  %p2906_p3 = scmp.lt.s32.totalorder %s2900_s5, %s2900_s5 }
  0x2e   :  { %2588 = vmatprep.subr.mxu0 %v62_v3  ;;  %2616 = vmatprep.subr.mxu1 %v2933_v0  ;;  %v57_v13 = vld [vmem:[#allocation6] sm:$0xff]  ;;  %v3005_v31 = vld [vmem:[#allocation6 + $0x170] sm:$0xff]  ;;  %v68_v38 = vld [vmem:[#allocation3 + $0x18] sm:$0xff] }
  0x2f   :  { %2589 = vmatpush3.msra.mxu0 %v62_v3  ;;  %2600 = vmatprep.mubr.msk.f32.mxu0 %vm73_vm1, %v65_v7  ;;  %v2991_v18 = vld [vmem:[#allocation8] ss:$0 sm:$0xff]  ;;  %v3016_v35 = vld [vmem:[#allocation6 + $0x150] sm:$0xff]  ;;  %v3026_v40 = vld [vmem:[#allocation6 + $0x138] sm:$0xff]  ;;  %p2907_p4 = por %p2906_p3, %p2905_p2 }
  0x30   :  { %2590 = vmatprep.subr.mxu0 %v61_v6  ;;  %2617 = vmatpush3.msra.mxu1 %v2977_v8  ;;  %v3010_v33 = vld [vmem:[#allocation6 + $0x160] sm:$0xff]  ;;  %v67_v37 = vld [vmem:[#allocation3 + $0x10] sm:$0xff]  ;;  %v3029_v42 = vld [vmem:[#allocation6 + $0xf8] sm:$0xff] }
  0x31   :  { %2591 = vmatpush3.msra.mxu0 %v61_v6  ;;  %2618 = vmatprep.subr.mxu1 %v2933_v0  ;;  %v3022_v39 = vld [vmem:[#allocation6 + $0x140] sm:$0xff]  ;;  %v3032_v43 = vld [vmem:[#allocation6 + $0x130] sm:$0xff]  ;;  %v70_v44 = vld [vmem:[#allocation3 + $0x28] sm:$0xff]  ;;  %v487_v6 = vsub.s32 0, %v486_v2  ;;  %p2908_p5 = pnand %p2907_p4, %p2901_p1 }
  0x32   :  { %2592 = vmatprep.subr.mxu0 %v60_v9  ;;  %2619 = vmatpush3.msra.mxu1 %v2981_v10  ;;  %v69_v41 = vld [vmem:[#allocation3 + $0x20] sm:$0xff]  ;;  %v3035_v45 = vld [vmem:[#allocation6 + $0xf0] sm:$0xff]  ;;  %v3038_v46 = vld [vmem:[#allocation6 + $0x128] sm:$0xff] }
  0x33   :  { %2593 = vmatpush3.msra.mxu0 %v60_v9  ;;  %2621 = vmatmul.mubr.f32.vlgmr.msra.gmra.mxu1 %v2933_v0  ;;  %v3042_v47 = vld [vmem:[#allocation6 + $0x120] sm:$0xff]  ;;  %v3045_v48 = vld [vmem:[#allocation6 + $0xe8] sm:$0xff]  ;;  %v3048_v50 = vld [vmem:[#allocation6 + $0x118] sm:$0xff] }
  0x34   :  { %2594 = vmatprep.subr.mxu0 %v59_v11  ;;  %401 = vmatprep.mubr.f32.mxu1 %v2933_v0  ;;  %v71_v51 = vld [vmem:[#allocation3 + $0x30] sm:$0xff]  ;;  %v3055_v53 = vld [vmem:[#allocation6 + $0xe0] sm:$0xff]  ;;  %v3058_v54 = vld [vmem:[#allocation6 + $0x108] sm:$0xff] }
  0x35   :  { %2595 = vmatpush3.msra.mxu0 %v59_v11  ;;  %353 = vmatprep.subr.mxu1 %v3003_v30  ;;  %v3053_v52 = vld [vmem:[#allocation6 + $0x110] sm:$0xff]  ;;  %v72_v55 = vld [vmem:[#allocation3 + $0x38] sm:$0xff]  ;;  %v3062_v56 = vld [vmem:[#allocation6 + $0x100] sm:$0xff] }
  0x36   :  { %2596 = vmatprep.subr.mxu0 %v58_v12  ;;  %354 = vmatpush1.msra.mxu1 %v3005_v31  ;;  %v3065_v57 = vld [vmem:[#allocation6 + $0xd8] sm:$0xff]  ;;  %v3071_v58 = vld [vmem:[#allocation6 + $0xd0] sm:$0xff]  ;;  %v3075_v59 = vld [vmem:[#allocation6 + $0xc8] sm:$0xff] }
  0x37   :  { %2597 = vmatpush3.msra.mxu0 %v58_v12  ;;  %355 = vmatprep.subr.mxu1 %v3007_v32  ;;  %v3079_v60 = vld [vmem:[#allocation6 + $0xc0] sm:$0xff] }
  0x38   :  { %2598 = vmatprep.subr.mxu0 %v57_v13  ;;  %356 = vmatpush1.msra.mxu1 %v3010_v33  ;;  %v56_v3 = vld [vmem:[#allocation8 + $0x1] ss:$8 sm:$0x3] }
  0x39   :  { %2599 = vmatpush3.msra.mxu0 %v57_v13  ;;  %357 = vmatprep.subr.mxu1 %v3013_v34  ;;  %v3126_v7 = vrot.slane %v56_v3, %v487_v6 }
  0x3a   :  { %2601 = vmatmul.mubr.msk.f32.vlgmr.msra.gmra.mxu0 %vm73_vm1, %v66_v14  ;;  %358 = vmatpush1.msra.mxu1 %v3016_v35 }
  0x3b   :  { %2603 = vmatprep.mubr.msk.f32.mxu0 %vm73_vm1, %v67_v37  ;;  %359 = vmatprep.subr.mxu1 %v3019_v36  ;;  %v491_v37 = vsub.s32 1, %v486_v2 }
  0x3c   :  { %360 = vmatpush1.msra.mxu1 %v3022_v39  ;;  %437 = vmatprep.subr.mxu0 %v3029_v42 }
  0x3d   :  { %361 = vmatprep.subr.mxu1 %v3026_v40  ;;  %438 = vmatpush1.msra.mxu0 %v3035_v45 }
  0x3e   :  { %2604 = vmatmul.mubr.msk.f32.gmra.mxu0 %vm73_vm1, %v68_v38  ;;  %362 = vmatpush1.msra.mxu1 %v3032_v43 }
  0x3f   :  { %2606 = vmatprep.mubr.msk.f32.mxu0 %vm73_vm1, %v69_v41  ;;  %363 = vmatprep.subr.mxu1 %v3038_v46 }
  0x40   :  { %364 = vmatpush1.msra.mxu1 %v3042_v47  ;;  %439 = vmatprep.subr.mxu0 %v3045_v48 }
  0x41   :  { %365 = vmatprep.subr.mxu1 %v3048_v50  ;;  %440 = vmatpush1.msra.mxu0 %v3055_v53 }
  0x42   :  { %2607 = vmatmul.mubr.msk.f32.gmra.mxu0 %vm73_vm1, %v70_v44  ;;  %366 = vmatpush1.msra.mxu1 %v3053_v52  ;;  %v3144_v44 = vrot.slane %v56_v3, %v491_v37 }
  0x43   :  { %2609 = vmatprep.mubr.msk.f32.mxu0 %vm73_vm1, %v71_v51  ;;  %367 = vmatprep.subr.mxu1 %v3058_v54 }
  0x44   :  { %368 = vmatpush1.msra.mxu1 %v3062_v56  ;;  %441 = vmatprep.subr.mxu0 %v3065_v57 }
  0x45   :  { %402 = vmatmul.mubr.f32.vlgmr.msra.gmra.mxu1 %v2933_v0  ;;  %2623 = vmatprep.subr.mxu1 %v2933_v0 }
  0x46   :  { %2610 = vmatmul.mubr.msk.f32.gmra.mxu0 %vm73_vm1, %v72_v55  ;;  %2624 = vmatpush3.msra.mxu1 %v2970_v4 }
  0x47   :  { %442 = vmatpush1.msra.mxu0 %v3071_v58  ;;  %2625 = vmatprep.subr.mxu1 %v2933_v0 }
  0x48   :  { %443 = vmatprep.subr.mxu0 %v3075_v59  ;;  %2626 = vmatpush3.msra.mxu1 %v2972_v5 }
  0x49   :  { %444 = vmatpush1.msra.mxu0 %v3079_v60  ;;  %2627 = vmatprep.subr.mxu1 %v2933_v0 }
  0x4a   :  { %477 = vmatprep.mubr.f32.mxu0 %v2933_v0  ;;  %2628 = vmatpush3.msra.mxu1 %v2977_v8 }
  0x4b   :  { %2631 = vmatprep.mubr.msk.f32.mxu1 %vm2934_vm0, %v2933_v0  ;;  %2629 = vmatprep.subr.mxu1 %v2933_v0 }
  0x4c   :  { %631 = vmatprep.subr.mxu0 %v3003_v30  ;;  %2630 = vmatpush3.msra.mxu1 %v2981_v10 }
  0x4d   :  { %715 = vmatprep.subr.mxu1 %v3029_v42 }
  0xf3   :  { %v286_v15 = vpop.f32.mrf.mxu1 }
  0xf5   :  { %v2622_v16 = vpop.f32.mrf.mxu1 }
  0xfa   :  { %v2989_v17 = vpop.f32.mrf.mxu0 }
  0xfb   :  { %v170_v12 = vadd.f32 %v2989_v17, %v2991_v18 }
  0xfc   :  { %v164_v19 = vpop.f32.mrf.mxu0 }
  0xfd   :  { %v165_v20 = vadd.f32 %v164_v19, %v2991_v18 }
  0xff   :  { %v290_v21 = vadd.f32 %v286_v15, %v165_v20 }
 0x101   :  { %2731 = vtanh.f32 %v290_v21 }
 0x105   :  { %v403_v9 = vpop.f32.mrf.mxu1 }
 0x107   :  { %v405_v11 = vpop.f32.mrf.mxu1 }
 0x10e   :  { %v2732_v22 = vpop.eup %2731 }
 0x10f   :  { %296 = vrot.lane.b32.xlu0 %v2732_v22, %s2935_s0  ;;  %v292_v23 = vmul.f32 0.5, %v2732_v22 }
 0x111   :  { %v2995_v24 = vadd.f32 0.5, %v292_v23  ;;  %v3132_v23 = vpop.f32.mrf.mxu0 }
 0x113   :  { %v294_v27 = vmul.f32 0.0, %v2995_v24 }
 0x181   :  { %v297_v25 = vpop.permute.xlu0 %296 }
 0x182   :  { %v299_v26 = vmul.f32 %v297_v25, %v2995_v24 }
 0x184   :  { %301 = vrot.lane.b32.xlu0 %v299_v26, %s2935_s0 }
 0x1f6   :  { %v302_v28 = vpop.permute.xlu0 %301 }
 0x1f7   :  { %v3000_v29 = vadd.f32 %v302_v28, %v294_v27 }
 0x1f9   :  { %2733 = vtanh.f32 %v3000_v29 }
 0x206   :  { %v2734_v49 = vpop.eup %2733 }
 0x207   :  { %307 = vrot.lane.b32.xlu1 %v2734_v49, %s2935_s0 }
 0x279   :  { %v308_v61 = vpop.permute.xlu1 %307 }
 0x27a   :  { %v310_v62 = vmul.f32 %v308_v61, %v2995_v24  ;;  %v3134_v24 = vpop.f32.mrf.mxu0 }
 0x27c   :  { %409 = vrot.lane.b32.xlu1 %v310_v62, %s2936_s2  ;;  %v3136_v25 = vpop.f32.mrf.mxu0 }
 0x27e   :  { %v3138_v17 = vpop.f32.mrf.mxu0 }
 0x280   :  { %v3140_v26 = vpop.f32.mrf.mxu0 }
 0x282   :  { %v3142_v27 = vpop.f32.mrf.mxu0 }
 0x2ee   :  { %v410_v63 = vpop.permute.xlu1 %409 }
 0x2ef   :  { %2496 = vmatmul.mubr.msk.f32.vlgmr.msra.gmra.mxu0 %vm216_vm2, %v410_v63  ;;  %2632 = vmatmul.mubr.msk.f32.vlgmr.msra.gmra.mxu1 %vm216_vm2, %v410_v63 }
 0x2f0   :  { %716 = vmatpush1.msra.mxu1 %v3035_v45  ;;  %755 = vmatprep.mubr.f32.mxu1 %v2933_v0 }
 0x2f1   :  { %717 = vmatprep.subr.mxu1 %v3045_v48  ;;  %632 = vmatpush1.msra.mxu0 %v3005_v31 }
 0x2f2   :  { %718 = vmatpush1.msra.mxu1 %v3055_v53  ;;  %633 = vmatprep.subr.mxu0 %v3007_v32 }
 0x2f3   :  { %719 = vmatprep.subr.mxu1 %v3065_v57  ;;  %634 = vmatpush1.msra.mxu0 %v3010_v33 }
 0x2f4   :  { %720 = vmatpush1.msra.mxu1 %v3071_v58  ;;  %635 = vmatprep.subr.mxu0 %v3013_v34 }
 0x2f5   :  { %721 = vmatprep.subr.mxu1 %v3075_v59  ;;  %636 = vmatpush1.msra.mxu0 %v3016_v35 }
 0x2f6   :  { %722 = vmatpush1.msra.mxu1 %v3079_v60  ;;  %637 = vmatprep.subr.mxu0 %v3019_v36 }
 0x2f7   :  { %2634 = vmatprep.subr.mxu1 %v2933_v0  ;;  %638 = vmatpush1.msra.mxu0 %v3022_v39 }
 0x2f8   :  { %639 = vmatprep.subr.mxu0 %v3026_v40  ;;  %679 = vmatprep.mubr.f32.mxu0 %v2933_v0 }
 0x2f9   :  { %640 = vmatpush1.msra.mxu0 %v3032_v43 }
 0x2fa   :  { %641 = vmatprep.subr.mxu0 %v3038_v46 }
 0x2fb   :  { %642 = vmatpush1.msra.mxu0 %v3042_v47 }
 0x2fc   :  { %643 = vmatprep.subr.mxu0 %v3048_v50 }
 0x2fd   :  { %644 = vmatpush1.msra.mxu0 %v3053_v52 }
 0x2fe   :  { %645 = vmatprep.subr.mxu0 %v3058_v54 }
 0x2ff   :  { %646 = vmatpush1.msra.mxu0 %v3062_v56 }
 0x300   :  { %898 = vmatprep.subr.mxu0 %v3003_v30 }
 0x3af   :  { %v587_v13 = vpop.f32.mrf.mxu1  ;;  %v479_v28 = vpop.f32.mrf.mxu0 }
 0x3b0   :  { %v591_v14 = vadd.f32 %v587_v13, %v170_v12  ;;  %v480_v1 = vadd.f32 %v479_v28, %v403_v9 }
 0x3b1   :  { %v2633_v15 = vpop.f32.mrf.mxu1  ;;  %v481_v38 = vpop.f32.mrf.mxu0 }
 0x3b2   :  { %2735 = vtanh.f32 %v591_v14  ;;  %v482_v41 = vadd.f32 %v481_v38, %v405_v11  ;;  %v495_v2 = vadd.f32 %v3126_v7, %v480_v1 }
 0x3b4   :  { %v496_v61 = vadd.f32 %v3144_v44, %v482_v41 }
 0x3bf   :  { %v2736_v16 = vpop.eup %2735 }
 0x3c0   :  { %597 = vrot.lane.b32.xlu0 %v2736_v16, %s2935_s0  ;;  %v593_v19 = vmul.f32 0.5, %v2736_v16 }
 0x3c2   :  { %v594_v20 = vadd.f32 0.5, %v593_v19 }
 0x3c4   :  { %v595_v49 = vmul.f32 %v594_v20, %v3000_v29 }
 0x432   :  { %v598_v21 = vpop.permute.xlu0 %597 }
 0x433   :  { %v600_v22 = vmul.f32 %v598_v21, %v594_v20 }
 0x435   :  { %602 = vrot.lane.b32.xlu1 %v600_v22, %s2935_s0 }
 0x4a7   :  { %v603_v51 = vpop.permute.xlu1 %602 }
 0x4a8   :  { %v3147_v55 = vadd.f32 %v603_v51, %v595_v49  ;;  %v175_v49 = vadd.f32 %v3134_v24, %v2991_v18 }
 0x4aa   :  { %2737 = vtanh.f32 %v3147_v55 }
 0x4ab   :  { %2739 = vtanh.f32 %v496_v61 }
 0x4ac   :  { %2741 = vtanh.f32 %v495_v2 }
 0x4b7   :  { %v2738_v62 = vpop.eup %2737 }
 0x4b8   :  { %608 = vrot.lane.b32.xlu0 %v2738_v62, %s2935_s0  ;;  %v2740_v63 = vpop.eup %2739 }
 0x4b9   :  { %v2742_v3 = vpop.eup %2741  ;;  %v500_v21 = vmul.f32 0.5, %v2740_v63 }
 0x4ba   :  { %v499_v29 = vmul.f32 0.5, %v2742_v3 }
 0x4bb   :  { %v502_v22 = vadd.f32 0.5, %v500_v21 }
 0x4bc   :  { %505 = vrot.lane.b32.xlu0 %v2740_v63, %s2936_s2  ;;  %v501_v12 = vadd.f32 0.5, %v499_v29 }
 0x4be   :  { %v503_v9 = vmul.f32 0.0, %v501_v12 }
 0x52a   :  { %v609_v6 = vpop.permute.xlu0 %608 }
 0x52b   :  { %v611_v11 = vmul.f32 %v609_v6, %v594_v20 }
 0x52d   :  { %687 = vrot.lane.b32.xlu1 %v611_v11, %s2936_s2 }
 0x52e   :  { %v506_v13 = vpop.permute.xlu0 %505 }
 0x52f   :  { %v508_v14 = vmul.f32 %v506_v13, %v501_v12 }
 0x531   :  { %510 = vrot.lane.b32.xlu0 %v508_v14, %s2936_s2 }
 0x59f   :  { %v688_v15 = vpop.permute.xlu1 %687 }
 0x5a0   :  { %2499 = vmatmul.mubr.msk.f32.vlgmr.msra.gmra.mxu1 %vm216_vm2, %v688_v15 }
 0x5a1   :  { %2635 = vmatpush3.msra.mxu1 %v2970_v4  ;;  %2642 = vmatprep.mubr.msk.f32.mxu1 %vm2934_vm0, %v2933_v0 }
 0x5a2   :  { %2636 = vmatprep.subr.mxu1 %v2933_v0 }
 0x5a3   :  { %2637 = vmatpush3.msra.mxu1 %v2972_v5  ;;  %v511_v16 = vpop.permute.xlu0 %510 }
 0x5a4   :  { %2638 = vmatprep.subr.mxu1 %v2933_v0  ;;  %v3163_v19 = vadd.f32 %v511_v16, %v503_v9 }
 0x5a5   :  { %2639 = vmatpush3.msra.mxu1 %v2977_v8 }
 0x5a6   :  { %2743 = vtanh.f32 %v3163_v19  ;;  %2640 = vmatprep.subr.mxu1 %v2933_v0 }
 0x5a7   :  { %2641 = vmatpush3.msra.mxu1 %v2981_v10 }
 0x5a8   :  { %2643 = vmatmul.mubr.msk.f32.vlgmr.msra.gmra.mxu1 %vm216_vm2, %v688_v15  ;;  %982 = vmatprep.subr.mxu1 %v3029_v42 }
 0x5a9   :  { %983 = vmatpush1.msra.mxu1 %v3035_v45  ;;  %1022 = vmatprep.mubr.f32.mxu1 %v2933_v0 }
 0x5aa   :  { %984 = vmatprep.subr.mxu1 %v3045_v48 }
 0x5ab   :  { %985 = vmatpush1.msra.mxu1 %v3055_v53 }
 0x5ac   :  { %986 = vmatprep.subr.mxu1 %v3065_v57 }
 0x5ad   :  { %987 = vmatpush1.msra.mxu1 %v3071_v58 }
 0x5ae   :  { %988 = vmatprep.subr.mxu1 %v3075_v59 }
 0x5af   :  { %989 = vmatpush1.msra.mxu1 %v3079_v60 }
 0x5b0   :  { %2645 = vmatprep.subr.mxu1 %v2933_v0 }
 0x5b3   :  { %v2744_v20 = vpop.eup %2743 }
 0x5b4   :  { %516 = vrot.lane.b32.xlu0 %v2744_v20, %s2936_s2 }
 0x626   :  { %v517_v28 = vpop.permute.xlu0 %516 }
 0x627   :  { %v519_v37 = vmul.f32 %v517_v28, %v502_v22 }
 0x629   :  { %2498 = vmatmul.mubr.msk.f32.vlgmr.msra.gmra.mxu0 %vm73_vm1, %v519_v37 }
 0x62a   :  { %899 = vmatpush1.msra.mxu0 %v3005_v31  ;;  %946 = vmatprep.mubr.f32.mxu0 %v2933_v0 }
 0x62b   :  { %900 = vmatprep.subr.mxu0 %v3007_v32 }
 0x62c   :  { %901 = vmatpush1.msra.mxu0 %v3010_v33 }
 0x62d   :  { %902 = vmatprep.subr.mxu0 %v3013_v34 }
 0x62e   :  { %903 = vmatpush1.msra.mxu0 %v3016_v35 }
 0x62f   :  { %904 = vmatprep.subr.mxu0 %v3019_v36 }
 0x630   :  { %905 = vmatpush1.msra.mxu0 %v3022_v39 }
 0x631   :  { %906 = vmatprep.subr.mxu0 %v3026_v40 }
 0x632   :  { %907 = vmatpush1.msra.mxu0 %v3032_v43 }
 0x633   :  { %908 = vmatprep.subr.mxu0 %v3038_v46 }
 0x634   :  { %909 = vmatpush1.msra.mxu0 %v3042_v47 }
 0x635   :  { %910 = vmatprep.subr.mxu0 %v3048_v50 }
 0x636   :  { %911 = vmatpush1.msra.mxu0 %v3053_v52 }
 0x637   :  { %912 = vmatprep.subr.mxu0 %v3058_v54 }
 0x638   :  { %913 = vmatpush1.msra.mxu0 %v3062_v56 }
 0x639   :  { %1165 = vmatprep.subr.mxu0 %v3003_v30 }
 0x660   :  { %v757_v38 = vpop.f32.mrf.mxu1 }
 0x662   :  { %v759_v41 = vpop.f32.mrf.mxu1 }
 0x668   :  { %v854_v51 = vpop.f32.mrf.mxu1 }
 0x669   :  { %v858_v61 = vadd.f32 %v854_v51, %v175_v49 }
 0x66a   :  { %v2644_v62 = vpop.f32.mrf.mxu1 }
 0x66b   :  { %2745 = vtanh.f32 %v858_v61 }
 0x678   :  { %v2746_v63 = vpop.eup %2745 }
 0x679   :  { %864 = vrot.lane.b32.xlu1 %v2746_v63, %s2935_s0  ;;  %v860_v1 = vmul.f32 0.5, %v2746_v63 }
 0x67b   :  { %v861_v2 = vadd.f32 0.5, %v860_v1 }
 0x67d   :  { %v862_v13 = vmul.f32 %v861_v2, %v3147_v55 }
 0x6e9   :  { %v681_v6 = vpop.f32.mrf.mxu0 }
 0x6ea   :  { %v758_v20 = vadd.f32 %v757_v38, %v681_v6 }
 0x6eb   :  { %v865_v3 = vpop.permute.xlu1 %864  ;;  %v683_v11 = vpop.f32.mrf.mxu0 }
 0x6ec   :  { %v867_v29 = vmul.f32 %v865_v3, %v861_v2  ;;  %v760_v12 = vadd.f32 %v759_v41, %v683_v11  ;;  %v762_v21 = vadd.f32 %v758_v20, %v3126_v7 }
 0x6ee   :  { %869 = vrot.lane.b32.xlu1 %v867_v29, %s2935_s0  ;;  %v763_v15 = vadd.f32 %v760_v12, %v3144_v44  ;;  %v180_v12 = vadd.f32 %v3132_v23, %v2991_v18 }
 0x760   :  { %v870_v14 = vpop.permute.xlu1 %869 }
 0x761   :  { %v3204_v24 = vadd.f32 %v870_v14, %v862_v13 }
 0x763   :  { %2747 = vtanh.f32 %v3204_v24 }
 0x764   :  { %2749 = vtanh.f32 %v763_v15 }
 0x765   :  { %2751 = vtanh.f32 %v762_v21 }
 0x770   :  { %v2748_v9 = vpop.eup %2747 }
 0x771   :  { %875 = vrot.lane.b32.xlu1 %v2748_v9, %s2935_s0  ;;  %v2750_v16 = vpop.eup %2749 }
 0x772   :  { %v2752_v22 = vpop.eup %2751  ;;  %v767_v1 = vmul.f32 0.5, %v2750_v16 }
 0x773   :  { %v766_v55 = vmul.f32 0.5, %v2752_v22 }
 0x775   :  { %772 = vrot.lane.b32.xlu1 %v2750_v16, %s2936_s2  ;;  %v768_v41 = vadd.f32 0.5, %v766_v55 }
 0x777   :  { %v770_v38 = vmul.f32 %v768_v41, %v3163_v19 }
 0x7e3   :  { %v876_v28 = vpop.permute.xlu1 %875 }
 0x7e4   :  { %v878_v37 = vmul.f32 %v876_v28, %v861_v2  ;;  %v769_v2 = vadd.f32 0.5, %v767_v1 }
 0x7e6   :  { %954 = vrot.lane.b32.xlu0 %v878_v37, %s2936_s2 }
 0x7e7   :  { %v773_v49 = vpop.permute.xlu1 %772 }
 0x7e8   :  { %v775_v51 = vmul.f32 %v773_v49, %v768_v41 }
 0x7ea   :  { %777 = vrot.lane.b32.xlu0 %v775_v51, %s2936_s2 }
 0x858   :  { %v955_v61 = vpop.permute.xlu0 %954 }
 0x859   :  { %2502 = vmatmul.mubr.msk.f32.vlgmr.msra.gmra.mxu1 %vm216_vm2, %v955_v61 }
 0x85a   :  { %2646 = vmatpush3.msra.mxu1 %v2970_v4  ;;  %2653 = vmatprep.mubr.msk.f32.mxu1 %vm2934_vm0, %v2933_v0 }
 0x85b   :  { %2647 = vmatprep.subr.mxu1 %v2933_v0 }
 0x85c   :  { %2648 = vmatpush3.msra.mxu1 %v2972_v5  ;;  %v778_v62 = vpop.permute.xlu0 %777 }
 0x85d   :  { %2649 = vmatprep.subr.mxu1 %v2933_v0  ;;  %v3221_v63 = vadd.f32 %v778_v62, %v770_v38 }
 0x85e   :  { %2650 = vmatpush3.msra.mxu1 %v2977_v8 }
 0x85f   :  { %2753 = vtanh.f32 %v3221_v63  ;;  %2651 = vmatprep.subr.mxu1 %v2933_v0 }
 0x860   :  { %2652 = vmatpush3.msra.mxu1 %v2981_v10 }
 0x861   :  { %2654 = vmatmul.mubr.msk.f32.vlgmr.msra.gmra.mxu1 %vm216_vm2, %v955_v61  ;;  %1249 = vmatprep.subr.mxu1 %v3029_v42 }
 0x862   :  { %1250 = vmatpush1.msra.mxu1 %v3035_v45  ;;  %1289 = vmatprep.mubr.f32.mxu1 %v2933_v0 }
 0x863   :  { %1251 = vmatprep.subr.mxu1 %v3045_v48 }
 0x864   :  { %1252 = vmatpush1.msra.mxu1 %v3055_v53 }
 0x865   :  { %1253 = vmatprep.subr.mxu1 %v3065_v57 }
 0x866   :  { %1254 = vmatpush1.msra.mxu1 %v3071_v58 }
 0x867   :  { %1255 = vmatprep.subr.mxu1 %v3075_v59 }
 0x868   :  { %1256 = vmatpush1.msra.mxu1 %v3079_v60 }
 0x869   :  { %2656 = vmatprep.subr.mxu1 %v2933_v0 }
 0x86c   :  { %v2754_v19 = vpop.eup %2753 }
 0x86d   :  { %783 = vrot.lane.b32.xlu0 %v2754_v19, %s2936_s2 }
 0x8df   :  { %v784_v3 = vpop.permute.xlu0 %783 }
 0x8e0   :  { %v786_v29 = vmul.f32 %v784_v3, %v769_v2 }
 0x8e2   :  { %2501 = vmatmul.mubr.msk.f32.vlgmr.msra.gmra.mxu0 %vm73_vm1, %v786_v29 }
 0x8e3   :  { %1166 = vmatpush1.msra.mxu0 %v3005_v31  ;;  %1213 = vmatprep.mubr.f32.mxu0 %v2933_v0 }
 0x8e4   :  { %1167 = vmatprep.subr.mxu0 %v3007_v32 }
 0x8e5   :  { %1168 = vmatpush1.msra.mxu0 %v3010_v33 }
 0x8e6   :  { %1169 = vmatprep.subr.mxu0 %v3013_v34 }
 0x8e7   :  { %1170 = vmatpush1.msra.mxu0 %v3016_v35 }
 0x8e8   :  { %1171 = vmatprep.subr.mxu0 %v3019_v36 }
 0x8e9   :  { %1172 = vmatpush1.msra.mxu0 %v3022_v39 }
 0x8ea   :  { %1173 = vmatprep.subr.mxu0 %v3026_v40 }
 0x8eb   :  { %1174 = vmatpush1.msra.mxu0 %v3032_v43 }
 0x8ec   :  { %1175 = vmatprep.subr.mxu0 %v3038_v46 }
 0x8ed   :  { %1176 = vmatpush1.msra.mxu0 %v3042_v47 }
 0x8ee   :  { %1177 = vmatprep.subr.mxu0 %v3048_v50 }
 0x8ef   :  { %1178 = vmatpush1.msra.mxu0 %v3053_v52 }
 0x8f0   :  { %1179 = vmatprep.subr.mxu0 %v3058_v54 }
 0x8f1   :  { %1180 = vmatpush1.msra.mxu0 %v3062_v56 }
 0x8f2   :  { %1432 = vmatprep.subr.mxu0 %v3003_v30 }
 0x919   :  { %v1024_v6 = vpop.f32.mrf.mxu1 }
 0x91b   :  { %v1026_v11 = vpop.f32.mrf.mxu1 }
 0x921   :  { %v1121_v13 = vpop.f32.mrf.mxu1 }
 0x922   :  { %v1125_v14 = vadd.f32 %v1121_v13, %v180_v12 }
 0x923   :  { %v2655_v15 = vpop.f32.mrf.mxu1 }
 0x924   :  { %2755 = vtanh.f32 %v1125_v14 }
 0x931   :  { %v2756_v9 = vpop.eup %2755 }
 0x932   :  { %1131 = vrot.lane.b32.xlu1 %v2756_v9, %s2935_s0  ;;  %v1127_v16 = vmul.f32 0.5, %v2756_v9 }
 0x934   :  { %v1128_v20 = vadd.f32 0.5, %v1127_v16 }
 0x936   :  { %v1129_v41 = vmul.f32 %v1128_v20, %v3204_v24 }
 0x9a2   :  { %v948_v55 = vpop.f32.mrf.mxu0 }
 0x9a3   :  { %v1025_v62 = vadd.f32 %v1024_v6, %v948_v55 }
 0x9a4   :  { %v1132_v21 = vpop.permute.xlu1 %1131  ;;  %v950_v28 = vpop.f32.mrf.mxu0 }
 0x9a5   :  { %v1134_v22 = vmul.f32 %v1132_v21, %v1128_v20  ;;  %v1027_v37 = vadd.f32 %v1026_v11, %v950_v28  ;;  %v1029_v19 = vadd.f32 %v1025_v62, %v3126_v7  ;;  %v185_v28 = vadd.f32 %v3138_v17, %v2991_v18 }
 0x9a7   :  { %1136 = vrot.lane.b32.xlu1 %v1134_v22, %s2935_s0  ;;  %v1030_v51 = vadd.f32 %v1027_v37, %v3144_v44 }
 0xa19   :  { %v1137_v49 = vpop.permute.xlu1 %1136 }
 0xa1a   :  { %v3262_v23 = vadd.f32 %v1137_v49, %v1129_v41 }
 0xa1c   :  { %2757 = vtanh.f32 %v3262_v23 }
 0xa1d   :  { %2759 = vtanh.f32 %v1030_v51 }
 0xa1e   :  { %2761 = vtanh.f32 %v1029_v19 }
 0xa29   :  { %v2758_v61 = vpop.eup %2757 }
 0xa2a   :  { %1142 = vrot.lane.b32.xlu0 %v2758_v61, %s2935_s0  ;;  %v2760_v38 = vpop.eup %2759 }
 0xa2b   :  { %v2762_v1 = vpop.eup %2761  ;;  %v1034_v9 = vmul.f32 0.5, %v2760_v38 }
 0xa2c   :  { %v1033_v24 = vmul.f32 0.5, %v2762_v1 }
 0xa2d   :  { %v1036_v16 = vadd.f32 0.5, %v1034_v9 }
 0xa2e   :  { %1039 = vrot.lane.b32.xlu0 %v2760_v38, %s2936_s2  ;;  %v1035_v29 = vadd.f32 0.5, %v1033_v24 }
 0xa30   :  { %v1037_v6 = vmul.f32 %v1035_v29, %v3221_v63 }
 0xa9c   :  { %v1143_v2 = vpop.permute.xlu0 %1142 }
 0xa9d   :  { %v1145_v3 = vmul.f32 %v1143_v2, %v1128_v20 }
 0xa9f   :  { %1221 = vrot.lane.b32.xlu1 %v1145_v3, %s2936_s2 }
 0xaa0   :  { %v1040_v11 = vpop.permute.xlu0 %1039 }
 0xaa1   :  { %v1042_v12 = vmul.f32 %v1040_v11, %v1035_v29 }
 0xaa3   :  { %1044 = vrot.lane.b32.xlu1 %v1042_v12, %s2936_s2 }
 0xb11   :  { %v1222_v13 = vpop.permute.xlu1 %1221 }
 0xb12   :  { %2505 = vmatmul.mubr.msk.f32.vlgmr.msra.gmra.mxu1 %vm216_vm2, %v1222_v13 }
 0xb13   :  { %2657 = vmatpush3.msra.mxu1 %v2970_v4  ;;  %2664 = vmatprep.mubr.msk.f32.mxu1 %vm2934_vm0, %v2933_v0 }
 0xb14   :  { %2658 = vmatprep.subr.mxu1 %v2933_v0 }
 0xb15   :  { %2659 = vmatpush3.msra.mxu1 %v2972_v5  ;;  %v1045_v14 = vpop.permute.xlu1 %1044 }
 0xb16   :  { %2660 = vmatprep.subr.mxu1 %v2933_v0  ;;  %v3279_v15 = vadd.f32 %v1045_v14, %v1037_v6 }
 0xb17   :  { %2661 = vmatpush3.msra.mxu1 %v2977_v8 }
 0xb18   :  { %2763 = vtanh.f32 %v3279_v15  ;;  %2662 = vmatprep.subr.mxu1 %v2933_v0 }
 0xb19   :  { %2663 = vmatpush3.msra.mxu1 %v2981_v10 }
 0xb1a   :  { %2665 = vmatmul.mubr.msk.f32.vlgmr.msra.gmra.mxu1 %vm216_vm2, %v1222_v13  ;;  %1516 = vmatprep.subr.mxu1 %v3029_v42 }
 0xb1b   :  { %1517 = vmatpush1.msra.mxu1 %v3035_v45  ;;  %1556 = vmatprep.mubr.f32.mxu1 %v2933_v0 }
 0xb1c   :  { %1518 = vmatprep.subr.mxu1 %v3045_v48 }
 0xb1d   :  { %1519 = vmatpush1.msra.mxu1 %v3055_v53 }
 0xb1e   :  { %1520 = vmatprep.subr.mxu1 %v3065_v57 }
 0xb1f   :  { %1521 = vmatpush1.msra.mxu1 %v3071_v58 }
 0xb20   :  { %1522 = vmatprep.subr.mxu1 %v3075_v59 }
 0xb21   :  { %1523 = vmatpush1.msra.mxu1 %v3079_v60 }
 0xb22   :  { %2667 = vmatprep.subr.mxu1 %v2933_v0 }
 0xb25   :  { %v2764_v63 = vpop.eup %2763 }
 0xb26   :  { %1050 = vrot.lane.b32.xlu0 %v2764_v63, %s2936_s2 }
 0xb98   :  { %v1051_v20 = vpop.permute.xlu0 %1050 }
 0xb99   :  { %v1053_v21 = vmul.f32 %v1051_v20, %v1036_v16 }
 0xb9b   :  { %2504 = vmatmul.mubr.msk.f32.vlgmr.msra.gmra.mxu0 %vm73_vm1, %v1053_v21 }
 0xb9c   :  { %1433 = vmatpush1.msra.mxu0 %v3005_v31  ;;  %1480 = vmatprep.mubr.f32.mxu0 %v2933_v0 }
 0xb9d   :  { %1434 = vmatprep.subr.mxu0 %v3007_v32 }
 0xb9e   :  { %1435 = vmatpush1.msra.mxu0 %v3010_v33 }
 0xb9f   :  { %1436 = vmatprep.subr.mxu0 %v3013_v34 }
 0xba0   :  { %1437 = vmatpush1.msra.mxu0 %v3016_v35 }
 0xba1   :  { %1438 = vmatprep.subr.mxu0 %v3019_v36 }
 0xba2   :  { %1439 = vmatpush1.msra.mxu0 %v3022_v39 }
 0xba3   :  { %1440 = vmatprep.subr.mxu0 %v3026_v40 }
 0xba4   :  { %1441 = vmatpush1.msra.mxu0 %v3032_v43 }
 0xba5   :  { %1442 = vmatprep.subr.mxu0 %v3038_v46 }
 0xba6   :  { %1443 = vmatpush1.msra.mxu0 %v3042_v47 }
 0xba7   :  { %1444 = vmatprep.subr.mxu0 %v3048_v50 }
 0xba8   :  { %1445 = vmatpush1.msra.mxu0 %v3053_v52 }
 0xba9   :  { %1446 = vmatprep.subr.mxu0 %v3058_v54 }
 0xbaa   :  { %1447 = vmatpush1.msra.mxu0 %v3062_v56 }
 0xbab   :  { %1699 = vmatprep.subr.mxu0 %v3003_v30 }
 0xbd2   :  { %v1291_v22 = vpop.f32.mrf.mxu1 }
 0xbd4   :  { %v1293_v55 = vpop.f32.mrf.mxu1 }
 0xbda   :  { %v1388_v37 = vpop.f32.mrf.mxu1 }
 0xbdb   :  { %v1392_v41 = vadd.f32 %v1388_v37, %v185_v28 }
 0xbdc   :  { %v2666_v49 = vpop.f32.mrf.mxu1 }
 0xbdd   :  { %2765 = vtanh.f32 %v1392_v41 }
 0xbea   :  { %v2766_v51 = vpop.eup %2765 }
 0xbeb   :  { %1398 = vrot.lane.b32.xlu1 %v2766_v51, %s2935_s0  ;;  %v1394_v61 = vmul.f32 0.5, %v2766_v51 }
 0xbed   :  { %v1395_v38 = vadd.f32 0.5, %v1394_v61 }
 0xbef   :  { %v1396_v3 = vmul.f32 %v1395_v38, %v3262_v23 }
 0xc5b   :  { %v1215_v1 = vpop.f32.mrf.mxu0 }
 0xc5c   :  { %v1292_v6 = vadd.f32 %v1291_v22, %v1215_v1 }
 0xc5d   :  { %v1399_v62 = vpop.permute.xlu1 %1398  ;;  %v1217_v24 = vpop.f32.mrf.mxu0 }
 0xc5e   :  { %v1401_v19 = vmul.f32 %v1399_v62, %v1395_v38  ;;  %v1294_v2 = vadd.f32 %v1293_v55, %v1217_v24  ;;  %v1296_v14 = vadd.f32 %v1292_v6, %v3126_v7 }
 0xc60   :  { %1403 = vrot.lane.b32.xlu0 %v1401_v19, %s2935_s0  ;;  %v1297_v11 = vadd.f32 %v1294_v2, %v3144_v44 }
 0xcd2   :  { %v1404_v29 = vpop.permute.xlu0 %1403 }
 0xcd3   :  { %v3320_v17 = vadd.f32 %v1404_v29, %v1396_v3 }
 0xcd5   :  { %2767 = vtanh.f32 %v3320_v17 }
 0xcd6   :  { %2769 = vtanh.f32 %v1297_v11 }
 0xcd7   :  { %2771 = vtanh.f32 %v1296_v14  ;;  %v3393_v14 = vld [vmem:[#allocation6 + $0xb0] sm:$0xff] }
 0xce2   :  { %v2768_v12 = vpop.eup %2767 }
 0xce3   :  { %1409 = vrot.lane.b32.xlu1 %v2768_v12, %s2935_s0  ;;  %v2770_v13 = vpop.eup %2769 }
 0xce4   :  { %v2772_v63 = vpop.eup %2771 }
 0xce5   :  { %v1300_v23 = vmul.f32 0.5, %v2772_v63  ;;  %v3399_v63 = vld [vmem:[#allocation6 + $0xa0] sm:$0xff] }
 0xce7   :  { %1306 = vrot.lane.b32.xlu1 %v2770_v13, %s2936_s2  ;;  %v1302_v20 = vadd.f32 0.5, %v1300_v23  ;;  %v3403_v23 = vld [vmem:[#allocation6 + $0x90] sm:$0xff] }
 0xce9   :  { %v1304_v22 = vmul.f32 %v1302_v20, %v3279_v15 }
 0xd55   :  { %v1410_v9 = vpop.permute.xlu1 %1409 }
 0xd56   :  { %v1412_v16 = vmul.f32 %v1410_v9, %v1395_v38  ;;  %v3407_v9 = vld [vmem:[#allocation6 + $0x80] sm:$0xff] }
 0xd58   :  { %1488 = vrot.lane.b32.xlu0 %v1412_v16, %s2936_s2 }
 0xd59   :  { %v1307_v21 = vpop.permute.xlu1 %1306 }
 0xd5a   :  { %v1309_v55 = vmul.f32 %v1307_v21, %v1302_v20 }
 0xd5c   :  { %1311 = vrot.lane.b32.xlu0 %v1309_v55, %s2936_s2  ;;  %v3444_v55 = vld [vmem:[#allocation6 + $0x138] sm:$0xff] }
 0xdca   :  { %v1489_v28 = vpop.permute.xlu0 %1488 }
 0xdcb   :  { %2508 = vmatmul.mubr.msk.f32.vlgmr.msra.gmra.mxu1 %vm216_vm2, %v1489_v28 }
 0xdcc   :  { %2668 = vmatpush3.msra.mxu1 %v2970_v4  ;;  %2675 = vmatprep.mubr.msk.f32.mxu1 %vm2934_vm0, %v2933_v0 }
 0xdcd   :  { %2669 = vmatprep.subr.mxu1 %v2933_v0 }
 0xdce   :  { %2670 = vmatpush3.msra.mxu1 %v2972_v5  ;;  %v1312_v37 = vpop.permute.xlu0 %1311  ;;  %v1301_v5 = vmul.f32 0.5, %v2770_v13 }
 0xdcf   :  { %2671 = vmatprep.subr.mxu1 %v2933_v0  ;;  %v3337_v41 = vadd.f32 %v1312_v37, %v1304_v22  ;;  %v3450_v22 = vld [vmem:[#allocation6 + $0x128] sm:$0xff]  ;;  %v3453_v37 = vld [vmem:[#allocation6 + $0x120] sm:$0xff] }
 0xdd0   :  { %2672 = vmatpush3.msra.mxu1 %v2977_v8  ;;  %v1303_v8 = vadd.f32 0.5, %v1301_v5  ;;  %v3462_v5 = vld [vmem:[#allocation6 + $0x108] sm:$0xff] }
 0xdd1   :  { %2773 = vtanh.f32 %v3337_v41  ;;  %2673 = vmatprep.subr.mxu1 %v2933_v0 }
 0xdd2   :  { %2674 = vmatpush3.msra.mxu1 %v2981_v10 }
 0xdd3   :  { %2676 = vmatmul.mubr.msk.f32.vlgmr.msra.gmra.mxu1 %vm216_vm2, %v1489_v28  ;;  %1783 = vmatprep.subr.mxu1 %v3029_v42  ;;  %v3447_v28 = vld [vmem:[#allocation6 + $0x130] sm:$0xff] }
 0xdd4   :  { %1784 = vmatpush1.msra.mxu1 %v3035_v45  ;;  %1823 = vmatprep.mubr.f32.mxu1 %v2933_v0 }
 0xdd5   :  { %1785 = vmatprep.subr.mxu1 %v3045_v48 }
 0xdd6   :  { %1786 = vmatpush1.msra.mxu1 %v3055_v53 }
 0xdd7   :  { %1787 = vmatprep.subr.mxu1 %v3065_v57 }
 0xdd8   :  { %1788 = vmatpush1.msra.mxu1 %v3071_v58 }
 0xdd9   :  { %1789 = vmatprep.subr.mxu1 %v3075_v59 }
 0xdda   :  { %1790 = vmatpush1.msra.mxu1 %v3079_v60 }
 0xddb   :  { %2678 = vmatprep.subr.mxu1 %v2933_v0 }
 0xdde   :  { %v2774_v4 = vpop.eup %2773 }
 0xddf   :  { %1317 = vrot.lane.b32.xlu1 %v2774_v4, %s2936_s2  ;;  %v3459_v4 = vld [vmem:[#allocation6 + $0x110] sm:$0xff] }
 0xe51   :  { %v1318_v10 = vpop.permute.xlu1 %1317 }
 0xe52   :  { %v1320_v15 = vmul.f32 %v1318_v10, %v1303_v8  ;;  %v3465_v8 = vld [vmem:[#allocation6 + $0x100] sm:$0xff]  ;;  %v2830_v10 = vld [vmem:[#allocation6 + $0x178] sm:$0xff] }
 0xe54   :  { %2507 = vmatmul.mubr.msk.f32.vlgmr.msra.gmra.mxu0 %vm73_vm1, %v1320_v15 }
 0xe55   :  { %1700 = vmatpush1.msra.mxu0 %v3005_v31  ;;  %1747 = vmatprep.mubr.f32.mxu0 %v2933_v0 }
 0xe56   :  { %1701 = vmatprep.subr.mxu0 %v3007_v32 }
 0xe57   :  { %1702 = vmatpush1.msra.mxu0 %v3010_v33  ;;  %v190_v33 = vadd.f32 %v3136_v25, %v2991_v18 }
 0xe58   :  { %1703 = vmatprep.subr.mxu0 %v3013_v34 }
 0xe59   :  { %1704 = vmatpush1.msra.mxu0 %v3016_v35 }
 0xe5a   :  { %1705 = vmatprep.subr.mxu0 %v3019_v36 }
 0xe5b   :  { %1706 = vmatpush1.msra.mxu0 %v3022_v39 }
 0xe5c   :  { %1707 = vmatprep.subr.mxu0 %v3026_v40 }
 0xe5d   :  { %1708 = vmatpush1.msra.mxu0 %v3032_v43 }
 0xe5e   :  { %1709 = vmatprep.subr.mxu0 %v3038_v46 }
 0xe5f   :  { %1710 = vmatpush1.msra.mxu0 %v3042_v47 }
 0xe60   :  { %1711 = vmatprep.subr.mxu0 %v3048_v50 }
 0xe61   :  { %1712 = vmatpush1.msra.mxu0 %v3053_v52 }
 0xe62   :  { %1713 = vmatprep.subr.mxu0 %v3058_v54 }
 0xe63   :  { %1714 = vmatpush1.msra.mxu0 %v3062_v56 }
 0xe64   :  { %1966 = vmatprep.subr.mxu0 %v3003_v30 }
 0xe8b   :  { %v1558_v31 = vpop.f32.mrf.mxu1 }
 0xe8d   :  { %v1560_v32 = vpop.f32.mrf.mxu1 }
 0xe93   :  { %v1655_v34 = vpop.f32.mrf.mxu1 }
 0xe94   :  { %v1659_v35 = vadd.f32 %v1655_v34, %v190_v33 }
 0xe95   :  { %v2677_v36 = vpop.f32.mrf.mxu1 }
 0xe96   :  { %2775 = vtanh.f32 %v1659_v35 }
 0xea3   :  { %v2776_v39 = vpop.eup %2775 }
 0xea4   :  { %1665 = vrot.lane.b32.xlu0 %v2776_v39, %s2935_s0  ;;  %v1661_v40 = vmul.f32 0.5, %v2776_v39 }
 0xea6   :  { %v1662_v46 = vadd.f32 0.5, %v1661_v40 }
 0xea8   :  { %v1663_v49 = vmul.f32 %v1662_v46, %v3320_v17 }
 0xf14   :  { %v1482_v43 = vpop.f32.mrf.mxu0 }
 0xf15   :  { %v1559_v56 = vadd.f32 %v1558_v31, %v1482_v43 }
 0xf16   :  { %v1666_v47 = vpop.permute.xlu0 %1665  ;;  %v1484_v50 = vpop.f32.mrf.mxu0 }
 0xf17   :  { %v1668_v52 = vmul.f32 %v1666_v47, %v1662_v46  ;;  %v1561_v54 = vadd.f32 %v1560_v32, %v1484_v50  ;;  %v1563_v25 = vadd.f32 %v1559_v56, %v3126_v7  ;;  %v3468_v32 = vld [vmem:[#allocation8] ss:$0 sm:$0xff] }
 0xf18   :  { %v195_v33 = vadd.f32 %v3468_v32, %v3142_v27 }
 0xf19   :  { %v1564_v30 = vadd.f32 %v1561_v54, %v3144_v44  ;;  %1670 = vrot.lane.b32.xlu1 %v1668_v52, %s2935_s0 }
 0xf1b   :  { %2777 = vtanh.f32 %v1564_v30 }
 0xf1c   :  { %2779 = vtanh.f32 %v1563_v25 }
 0xf28   :  { %v2778_v18 = vpop.eup %2777 }
 0xf29   :  { %1573 = vrot.lane.b32.xlu1 %v2778_v18, %s2936_s2  ;;  %v2780_v38 = vpop.eup %2779  ;;  %v1568_v16 = vmul.f32 0.5, %v2778_v18 }
 0xf2a   :  { %v1567_v62 = vmul.f32 0.5, %v2780_v38 }
 0xf2b   :  { %v1570_v20 = vadd.f32 0.5, %v1568_v16 }
 0xf2c   :  { %v1569_v19 = vadd.f32 0.5, %v1567_v62 }
 0xf2e   :  { %v1571_v11 = vmul.f32 %v1569_v19, %v3337_v41  ;;  %v3456_v41 = vld [vmem:[#allocation6 + $0x118] sm:$0xff] }
 0xf8b   :  { %v1671_v51 = vpop.permute.xlu1 %1670 }
 0xf8c   :  { %v3381_v61 = vadd.f32 %v1671_v51, %v1663_v49 }
 0xf8e   :  { %2781 = vtanh.f32 %v3381_v61 }
 0xf9b   :  { %v2782_v1 = vpop.eup %2781  ;;  %v1574_v24 = vpop.permute.xlu1 %1573 }
 0xf9c   :  { %1676 = vrot.lane.b32.xlu0 %v2782_v1, %s2935_s0  ;;  %v1576_v2 = vmul.f32 %v1574_v24, %v1569_v19 }
 0xf9e   :  { %1578 = vrot.lane.b32.xlu1 %v1576_v2, %s2936_s2 }
0x100e   :  { %v1677_v3 = vpop.permute.xlu0 %1676 }
0x100f   :  { %v1679_v29 = vmul.f32 %v1677_v3, %v1662_v46 }
0x1010   :  { %v1579_v17 = vpop.permute.xlu1 %1578 }
0x1011   :  { %1755 = vrot.lane.b32.xlu0 %v1679_v29, %s2936_s2  ;;  %v3388_v12 = vadd.f32 %v1579_v17, %v1571_v11 }
0x1013   :  { %2783 = vtanh.f32 %v3388_v12 }
0x1020   :  { %v2784_v13 = vpop.eup %2783 }
0x1021   :  { %1584 = vrot.lane.b32.xlu0 %v2784_v13, %s2936_s2 }
0x1083   :  { %v1756_v6 = vpop.permute.xlu0 %1755 }
0x1084   :  { %2511 = vmatmul.mubr.msk.f32.vlgmr.msra.gmra.mxu1 %vm216_vm2, %v1756_v6 }
0x1085   :  { %2679 = vmatpush3.msra.mxu1 %v3393_v14  ;;  %2686 = vmatprep.mubr.msk.f32.mxu1 %vm2934_vm0, %v2933_v0 }
0x1086   :  { %2680 = vmatprep.subr.mxu1 %v2933_v0 }
0x1087   :  { %2681 = vmatpush3.msra.mxu1 %v3399_v63 }
0x1088   :  { %2682 = vmatprep.subr.mxu1 %v2933_v0 }
0x1089   :  { %2683 = vmatpush3.msra.mxu1 %v3403_v23 }
0x108a   :  { %2684 = vmatprep.subr.mxu1 %v2933_v0 }
0x108b   :  { %2685 = vmatpush3.msra.mxu1 %v3407_v9 }
0x108c   :  { %2687 = vmatmul.mubr.msk.f32.vlgmr.msra.gmra.mxu1 %vm216_vm2, %v1756_v6  ;;  %2050 = vmatprep.subr.mxu1 %v3029_v42 }
0x108d   :  { %2051 = vmatpush1.msra.mxu1 %v3035_v45  ;;  %2090 = vmatprep.mubr.f32.mxu1 %v2933_v0  ;;  %v3422_v45 = vld [vmem:[#allocation6 + $0x170] sm:$0xff] }
0x108e   :  { %2052 = vmatprep.subr.mxu1 %v3045_v48  ;;  %v3426_v48 = vld [vmem:[#allocation6 + $0x168] sm:$0xff] }
0x108f   :  { %2053 = vmatpush1.msra.mxu1 %v3055_v53  ;;  %v3429_v53 = vld [vmem:[#allocation6 + $0x160] sm:$0xff] }
0x1090   :  { %2054 = vmatprep.subr.mxu1 %v3065_v57  ;;  %v3432_v57 = vld [vmem:[#allocation6 + $0x158] sm:$0xff] }
0x1091   :  { %2055 = vmatpush1.msra.mxu1 %v3071_v58  ;;  %v3435_v58 = vld [vmem:[#allocation6 + $0x150] sm:$0xff] }
0x1092   :  { %2056 = vmatprep.subr.mxu1 %v3075_v59  ;;  %v3438_v59 = vld [vmem:[#allocation6 + $0x148] sm:$0xff] }
0x1093   :  { %v1585_v21 = vpop.permute.xlu0 %1584  ;;  %2057 = vmatpush1.msra.mxu1 %v3079_v60  ;;  %v3441_v60 = vld [vmem:[#allocation6 + $0x140] sm:$0xff] }
0x1094   :  { %v1587_v42 = vmul.f32 %v1585_v21, %v1570_v20  ;;  %2689 = vmatprep.subr.mxu1 %v2933_v0 }
0x1096   :  { %2510 = vmatmul.mubr.msk.f32.vlgmr.msra.gmra.mxu0 %vm73_vm1, %v1587_v42  ;;  %v2832_v42 = vld [vmem:[#allocation6 + $0xf8] sm:$0xff] }
0x1097   :  { %1967 = vmatpush1.msra.mxu0 %v3422_v45  ;;  %2014 = vmatprep.mubr.f32.mxu0 %v2933_v0 }
0x1098   :  { %1968 = vmatprep.subr.mxu0 %v3426_v48 }
0x1099   :  { %1969 = vmatpush1.msra.mxu0 %v3429_v53 }
0x109a   :  { %1970 = vmatprep.subr.mxu0 %v3432_v57 }
0x109b   :  { %1971 = vmatpush1.msra.mxu0 %v3435_v58 }
0x109c   :  { %1972 = vmatprep.subr.mxu0 %v3438_v59 }
0x109d   :  { %1973 = vmatpush1.msra.mxu0 %v3441_v60 }
0x109e   :  { %1974 = vmatprep.subr.mxu0 %v3444_v55 }
0x109f   :  { %1975 = vmatpush1.msra.mxu0 %v3447_v28 }
0x10a0   :  { %1976 = vmatprep.subr.mxu0 %v3450_v22 }
0x10a1   :  { %1977 = vmatpush1.msra.mxu0 %v3453_v37 }
0x10a2   :  { %1978 = vmatprep.subr.mxu0 %v3456_v41 }
0x10a3   :  { %1979 = vmatpush1.msra.mxu0 %v3459_v4 }
0x10a4   :  { %1980 = vmatprep.subr.mxu0 %v3462_v5 }
0x10a5   :  { %1981 = vmatpush1.msra.mxu0 %v3465_v8 }
0x10a6   :  { %2233 = vmatprep.subr.mxu0 %v2830_v10 }
0x1144   :  { %v1825_v15 = vpop.f32.mrf.mxu1 }
0x1146   :  { %v1827_v31 = vpop.f32.mrf.mxu1 }
0x114c   :  { %v1922_v34 = vpop.f32.mrf.mxu1 }
0x114d   :  { %v1926_v35 = vadd.f32 %v1922_v34, %v195_v33 }
0x114e   :  { %v2688_v36 = vpop.f32.mrf.mxu1 }
0x114f   :  { %2785 = vtanh.f32 %v1926_v35 }
0x1156   :  { %v1749_v39 = vpop.f32.mrf.mxu0 }
0x1157   :  { %v1826_v40 = vadd.f32 %v1825_v15, %v1749_v39 }
0x1158   :  { %v1751_v43 = vpop.f32.mrf.mxu0 }
0x1159   :  { %v1828_v46 = vadd.f32 %v1827_v31, %v1751_v43  ;;  %v1830_v54 = vadd.f32 %v1826_v40, %v3126_v7 }
0x115b   :  { %v1831_v47 = vadd.f32 %v1828_v46, %v3144_v44 }
0x115c   :  { %v2786_v50 = vpop.eup %2785 }
0x115d   :  { %2787 = vtanh.f32 %v1831_v47  ;;  %1932 = vrot.lane.b32.xlu1 %v2786_v50, %s2935_s0  ;;  %v1928_v27 = vmul.f32 0.5, %v2786_v50 }
0x115e   :  { %2789 = vtanh.f32 %v1830_v54 }
0x115f   :  { %v1929_v30 = vadd.f32 0.5, %v1928_v27 }
0x1161   :  { %v1930_v19 = vmul.f32 %v1929_v30, %v3381_v61 }
0x116a   :  { %v2788_v52 = vpop.eup %2787 }
0x116b   :  { %1840 = vrot.lane.b32.xlu1 %v2788_v52, %s2936_s2  ;;  %v2790_v25 = vpop.eup %2789  ;;  %v1835_v6 = vmul.f32 0.5, %v2788_v52 }
0x116c   :  { %v1834_v49 = vmul.f32 0.5, %v2790_v25 }
0x116d   :  { %v1837_v16 = vadd.f32 0.5, %v1835_v6 }
0x116e   :  { %v1836_v51 = vadd.f32 0.5, %v1834_v49 }
0x1170   :  { %v1838_v2 = vmul.f32 %v1836_v51, %v3388_v12 }
0x11cf   :  { %v1933_v18 = vpop.permute.xlu1 %1932 }
0x11d0   :  { %v1935_v56 = vmul.f32 %v1933_v18, %v1929_v30 }
0x11d2   :  { %1937 = vrot.lane.b32.xlu0 %v1935_v56, %s2935_s0 }
0x11dd   :  { %v1841_v38 = vpop.permute.xlu1 %1840 }
0x11de   :  { %v1843_v62 = vmul.f32 %v1841_v38, %v1836_v51 }
0x11e0   :  { %1845 = vrot.lane.b32.xlu1 %v1843_v62, %s2936_s2 }
0x1244   :  { %v1938_v1 = vpop.permute.xlu0 %1937 }
0x1245   :  { %v3479_v24 = vadd.f32 %v1938_v1, %v1930_v19 }
0x1247   :  { %2791 = vtanh.f32 %v3479_v24 }
0x1252   :  { %v1846_v3 = vpop.permute.xlu1 %1845 }
0x1253   :  { %v3483_v29 = vadd.f32 %v1846_v3, %v1838_v2 }
0x1254   :  { %v2792_v11 = vpop.eup %2791 }
0x1255   :  { %2793 = vtanh.f32 %v3483_v29  ;;  %1943 = vrot.lane.b32.xlu0 %v2792_v11, %s2935_s0 }
0x1262   :  { %v2794_v17 = vpop.eup %2793 }
0x1263   :  { %1851 = vrot.lane.b32.xlu1 %v2794_v17, %s2936_s2 }
0x12c7   :  { %v1944_v13 = vpop.permute.xlu0 %1943 }
0x12c8   :  { %v1946_v61 = vmul.f32 %v1944_v13, %v1929_v30 }
0x12ca   :  { %2022 = vrot.lane.b32.xlu0 %v1946_v61, %s2936_s2 }
0x12d5   :  { %v1852_v20 = vpop.permute.xlu1 %1851 }
0x12d6   :  { %v1854_v21 = vmul.f32 %v1852_v20, %v1837_v16 }
0x12d8   :  { %2513 = vmatmul.mubr.msk.f32.vlgmr.msra.gmra.mxu0 %vm73_vm1, %v1854_v21 }
0x12d9   :  { %2234 = vmatpush1.msra.mxu0 %v3422_v45  ;;  %2281 = vmatprep.mubr.f32.mxu0 %v2933_v0  ;;  %v2834_v45 = vld [vmem:[#allocation6 + $0xe8] sm:$0xff] }
0x12da   :  { %2235 = vmatprep.subr.mxu0 %v3426_v48  ;;  %v2835_v48 = vld [vmem:[#allocation6 + $0xe0] sm:$0xff] }
0x12db   :  { %2236 = vmatpush1.msra.mxu0 %v3429_v53  ;;  %v2837_v53 = vld [vmem:[#allocation6 + $0xd0] sm:$0xff] }
0x12dc   :  { %2237 = vmatprep.subr.mxu0 %v3432_v57  ;;  %v2839_v57 = vld [vmem:[#allocation6 + $0xc0] sm:$0xff] }
0x12dd   :  { %2238 = vmatpush1.msra.mxu0 %v3435_v58 }
0x12de   :  { %2239 = vmatprep.subr.mxu0 %v3438_v59 }
0x12df   :  { %2240 = vmatpush1.msra.mxu0 %v3441_v60 }
0x12e0   :  { %2241 = vmatprep.subr.mxu0 %v3444_v55 }
0x12e1   :  { %2242 = vmatpush1.msra.mxu0 %v3447_v28 }
0x12e2   :  { %2243 = vmatprep.subr.mxu0 %v3450_v22  ;;  %v200_v22 = vadd.f32 %v3468_v32, %v3140_v26 }
0x12e3   :  { %2244 = vmatpush1.msra.mxu0 %v3453_v37 }
0x12e4   :  { %2245 = vmatprep.subr.mxu0 %v3456_v41 }
0x12e5   :  { %2246 = vmatpush1.msra.mxu0 %v3459_v4 }
0x12e6   :  { %2247 = vmatprep.subr.mxu0 %v3462_v5 }
0x12e7   :  { %2248 = vmatpush1.msra.mxu0 %v3465_v8 }
0x133c   :  { %v2023_v12 = vpop.permute.xlu0 %2022 }
0x133d   :  { %2514 = vmatmul.mubr.msk.f32.vlgmr.msra.gmra.mxu1 %vm216_vm2, %v2023_v12 }
0x133e   :  { %2690 = vmatpush3.msra.mxu1 %v3393_v14  ;;  %2697 = vmatprep.mubr.msk.f32.mxu1 %vm2934_vm0, %v2933_v0  ;;  %v2833_v14 = vld [vmem:[#allocation6 + $0xf0] sm:$0xff] }
0x133f   :  { %2691 = vmatprep.subr.mxu1 %v2933_v0 }
0x1340   :  { %2692 = vmatpush3.msra.mxu1 %v3399_v63  ;;  %v2836_v63 = vld [vmem:[#allocation6 + $0xd8] sm:$0xff] }
0x1341   :  { %2693 = vmatprep.subr.mxu1 %v2933_v0 }
0x1342   :  { %2694 = vmatpush3.msra.mxu1 %v3403_v23  ;;  %v2838_v23 = vld [vmem:[#allocation6 + $0xc8] sm:$0xff] }
0x1343   :  { %2695 = vmatprep.subr.mxu1 %v2933_v0 }
0x1344   :  { %2696 = vmatpush3.msra.mxu1 %v3407_v9 }
0x1345   :  { %2698 = vmatmul.mubr.msk.f32.vlgmr.msra.gmra.mxu1 %vm216_vm2, %v2023_v12  ;;  %2317 = vmatprep.subr.mxu1 %v2832_v42  ;;  %v2396_v12 = vld [vmem:[#allocation6 + $0x1f0] sm:$0xff]  ;;  %v2395_v42 = vld [vmem:[#allocation6 + $0x1e0] sm:$0xff] }
0x1346   :  { %2318 = vmatpush1.msra.mxu1 %v2833_v14  ;;  %2357 = vmatprep.mubr.f32.mxu1 %v2933_v0  ;;  %v2393_v14 = vld [vmem:[#allocation6 + $0x1c0] sm:$0xff] }
0x1347   :  { %2319 = vmatprep.subr.mxu1 %v2834_v45  ;;  %v2391_v45 = vld [vmem:[#allocation6 + $0x1a0] sm:$0xff] }
0x1348   :  { %2320 = vmatpush1.msra.mxu1 %v2835_v48  ;;  %v2390_v48 = vld [vmem:[#allocation6 + $0x190] sm:$0xff] }
0x1349   :  { %2321 = vmatprep.subr.mxu1 %v2836_v63 }
0x134a   :  { %2322 = vmatpush1.msra.mxu1 %v2837_v53 }
0x134b   :  { %2323 = vmatprep.subr.mxu1 %v2838_v23 }
0x134c   :  { %2324 = vmatpush1.msra.mxu1 %v2839_v57  ;;  %v2389_v57 = vld [vmem:[#allocation6 + $0x180] sm:$0xff] }
0x134d   :  { %2700 = vmatprep.subr.mxu1 %v2933_v0 }
0x1398   :  { %v2016_v9 = vpop.f32.mrf.mxu0 }
0x139a   :  { %v2018_v59 = vpop.f32.mrf.mxu0 }
0x13fd   :  { %v2092_v58 = vpop.f32.mrf.mxu1 }
0x13fe   :  { %v2093_v10 = vadd.f32 %v2092_v58, %v2016_v9 }
0x13ff   :  { %v2094_v60 = vpop.f32.mrf.mxu1 }
0x1400   :  { %v2095_v55 = vadd.f32 %v2094_v60, %v2018_v59  ;;  %v2097_v15 = vadd.f32 %v2093_v10, %v3126_v7 }
0x1402   :  { %v2098_v28 = vadd.f32 %v2095_v55, %v3144_v44 }
0x1404   :  { %2795 = vtanh.f32 %v2098_v28  ;;  %v2397_v28 = vld [vmem:[#allocation8 + $0x2] ss:$0 sm:$0xff] }
0x1405   :  { %v2189_v37 = vpop.f32.mrf.mxu1 }
0x1406   :  { %v2193_v41 = vadd.f32 %v2189_v37, %v200_v22 }
0x1407   :  { %v2699_v4 = vpop.f32.mrf.mxu1 }
0x1408   :  { %2797 = vtanh.f32 %v2193_v41 }
0x1409   :  { %2799 = vtanh.f32 %v2097_v15 }
0x1411   :  { %v2796_v5 = vpop.eup %2795 }
0x1412   :  { %2107 = vrot.lane.b32.xlu1 %v2796_v5, %s2936_s2  ;;  %v2102_v18 = vmul.f32 0.5, %v2796_v5 }
0x1414   :  { %v2104_v56 = vadd.f32 0.5, %v2102_v18 }
0x1415   :  { %v2798_v8 = vpop.eup %2797 }
0x1416   :  { %2199 = vrot.lane.b32.xlu0 %v2798_v8, %s2935_s0  ;;  %v2800_v31 = vpop.eup %2799  ;;  %v2195_v35 = vmul.f32 0.5, %v2798_v8 }
0x1417   :  { %v2101_v33 = vmul.f32 0.5, %v2800_v31 }
0x1418   :  { %v2196_v36 = vadd.f32 0.5, %v2195_v35 }
0x1419   :  { %v2103_v34 = vadd.f32 0.5, %v2101_v33 }
0x141a   :  { %v2197_v50 = vmul.f32 %v2196_v36, %v3479_v24 }
0x141b   :  { %v2105_v43 = vmul.f32 %v2103_v34, %v3483_v29 }
0x1484   :  { %v2108_v26 = vpop.permute.xlu1 %2107 }
0x1485   :  { %v2110_v32 = vmul.f32 %v2108_v26, %v2103_v34 }
0x1487   :  { %2112 = vrot.lane.b32.xlu1 %v2110_v32, %s2936_s2 }
0x1488   :  { %v2200_v39 = vpop.permute.xlu0 %2199 }
0x1489   :  { %v2202_v40 = vmul.f32 %v2200_v39, %v2196_v36 }
0x148b   :  { %2204 = vrot.lane.b32.xlu0 %v2202_v40, %s2935_s0 }
0x14f9   :  { %v2113_v46 = vpop.permute.xlu1 %2112 }
0x14fa   :  { %v2115_v47 = vadd.f32 %v2113_v46, %v2105_v43 }
0x14fc   :  { %2801 = vtanh.f32 %v2115_v47 }
0x14fd   :  { %v2205_v52 = vpop.permute.xlu0 %2204 }
0x14fe   :  { %v2207_v54 = vadd.f32 %v2205_v52, %v2197_v50 }
0x1500   :  { %2803 = vtanh.f32 %v2207_v54 }
0x1509   :  { %v2802_v27 = vpop.eup %2801 }
0x150a   :  { %2118 = vrot.lane.b32.xlu1 %v2802_v27, %s2936_s2 }
0x150d   :  { %v2804_v30 = vpop.eup %2803 }
0x150e   :  { %2210 = vrot.lane.b32.xlu0 %v2804_v30, %s2935_s0 }
0x157c   :  { %v2119_v25 = vpop.permute.xlu1 %2118 }
0x157d   :  { %v2121_v49 = vmul.f32 %v2119_v25, %v2104_v56 }
0x157f   :  { %2516 = vmatmul.mubr.msk.f32.vlgmr.msra.gmra.mxu0 %vm73_vm1, %v2121_v49 }
0x1580   :  { %v2211_v51 = vpop.permute.xlu0 %2210 }
0x1581   :  { %v2213_v38 = vmul.f32 %v2211_v51, %v2196_v36 }
0x1583   :  { %2289 = vrot.lane.b32.xlu0 %v2213_v38, %s2936_s2 }
0x15f5   :  { %v2290_v62 = vpop.permute.xlu0 %2289 }
0x15f6   :  { %2517 = vmatmul.mubr.msk.f32.vlgmr.msra.gmra.mxu1 %vm216_vm2, %v2290_v62 }
0x15f7   :  { %2716 = vmatprep.mubr.msk.f32.mxu1 %vm2934_vm0, %v2933_v0  ;;  %2701 = vmatpush3.msra.mxu1 %v2396_v12 }
0x15f8   :  { %2702 = vmatprep.subr.mxu1 %v2933_v0 }
0x15f9   :  { %2703 = vmatpush3.msra.mxu1 %v2395_v42 }
0x15fa   :  { %2704 = vmatprep.subr.mxu1 %v2933_v0 }
0x163f   :  { %v2283_v19 = vpop.f32.mrf.mxu0 }
0x1641   :  { %v2285_v24 = vpop.f32.mrf.mxu0 }
0x16b6   :  { %v2359_v1 = vpop.f32.mrf.mxu1 }
0x16b7   :  { %v2360_v17 = vadd.f32 %v2359_v1, %v2283_v19 }
0x16b8   :  { %v2361_v2 = vpop.f32.mrf.mxu1 }
0x16b9   :  { %v2362_v3 = vadd.f32 %v2361_v2, %v2285_v24  ;;  %v2364_v13 = vadd.f32 %v2360_v17, %v3126_v7  ;;  %v2392_v7 = vld [vmem:[#allocation6 + $0x1b0] sm:$0xff] }
0x16bb   :  { %v2365_v29 = vadd.f32 %v2362_v3, %v3144_v44  ;;  %v2394_v44 = vld [vmem:[#allocation6 + $0x1d0] sm:$0xff] }
0x16bc   :  { %2705 = vmatpush3.msra.mxu1 %v2394_v44 }
0x16bd   :  { %2805 = vtanh.f32 %v2365_v29  ;;  %2706 = vmatprep.subr.mxu1 %v2933_v0 }
0x16be   :  { %2807 = vtanh.f32 %v2364_v13  ;;  %2707 = vmatpush3.msra.mxu1 %v2393_v14 }
0x16bf   :  { %2708 = vmatprep.subr.mxu1 %v2933_v0 }
0x16c0   :  { %2709 = vmatpush3.msra.mxu1 %v2392_v7 }
0x16c1   :  { %2710 = vmatprep.subr.mxu1 %v2933_v0 }
0x16c2   :  { %2711 = vmatpush3.msra.mxu1 %v2391_v45 }
0x16c3   :  { %2712 = vmatprep.subr.mxu1 %v2933_v0 }
0x16c4   :  { %2713 = vmatpush3.msra.mxu1 %v2390_v48 }
0x16c5   :  { %2714 = vmatprep.subr.mxu1 %v2933_v0 }
0x16c6   :  { %2715 = vmatpush3.msra.mxu1 %v2389_v57 }
0x16ca   :  { %v2806_v11 = vpop.eup %2805 }
0x16cb   :  { %2374 = vrot.lane.b32.xlu1 %v2806_v11, %s2936_s2  ;;  %v2808_v61 = vpop.eup %2807  ;;  %v2369_v58 = vmul.f32 0.5, %v2806_v11 }
0x16cc   :  { %v2368_v6 = vmul.f32 0.5, %v2808_v61 }
0x16cd   :  { %v2371_v59 = vadd.f32 0.5, %v2369_v58 }
0x16ce   :  { %v2370_v16 = vadd.f32 0.5, %v2368_v6 }
0x16d0   :  { %v2372_v63 = vmul.f32 %v2370_v16, %v2115_v47 }
0x173d   :  { %v2375_v20 = vpop.permute.xlu1 %2374 }
0x173e   :  { %v2377_v21 = vmul.f32 %v2375_v20, %v2370_v16 }
0x1740   :  { %2379 = vrot.lane.b32.xlu0 %v2377_v21, %s2936_s2 }
0x17b2   :  { %v2380_v53 = vpop.permute.xlu0 %2379 }
0x17b3   :  { %v2382_v23 = vadd.f32 %v2380_v53, %v2372_v63 }
0x17b5   :  { %2809 = vtanh.f32 %v2382_v23 }
0x17c2   :  { %v2810_v9 = vpop.eup %2809 }
0x17c3   :  { %2385 = vrot.lane.b32.xlu1 %v2810_v9, %s2936_s2 }
0x1835   :  { %v2386_v60 = vpop.permute.xlu1 %2385 }
0x1836   :  { %v2388_v55 = vmul.f32 %v2386_v60, %v2371_v59 }
0x1838   :  { %2717 = vmatmul.mubr.msk.f32.vlgmr.msra.gmra.mxu1 %vm73_vm1, %v2388_v55 }
0x18f8   :  { %v2467_v22 = vpop.f32.mrf.mxu1 }
0x18f9   :  { %v2468_v0 = vadd.f32 %v2467_v22, %v2397_v28 }
0x18fa   :  { %v2718_v37 = vpop.f32.mrf.mxu1 }
0x18fb   :  { %2471 = vst.msk [vmem:[#allocation9] sm:$0xff] %vm216_vm2, %v2468_v0 }
0x18fc   :  { %2911 = shalt.err (!%p2908_p5)
}
0x18fd   :  { %2481 = dma.vmem_to_hbm [thread:$0]  %s2479_s4, 128, %s3556_s3, [#allocation5]  }
0x18fe   :  { %2924 = dma.done.wait [#allocation5], 128  }
0x18ff   :  { %2925 = vsyncadd [#allocation5], 4294967168 }
0x1900   :  { %2485 = vsyncpa [#allocation4], 1 }
0x1901   :  { %2486 = vsyncpa [#allocation7], 1 }
0x1902   :  { %2487 = vsyncpa [#allocation5], 1 }

</bundles_post_ra>
